<compile_context>
chip_gen: v7x
topology: tpu7x:2x2x1
jax: 0.10.0
libtpu: 0.0.40
codegen_flags: <defaults>
</compile_context>

<pallas_src>
import functools

import jax
import jax.numpy as jnp
from jax.experimental import pallas as pl
from jax.experimental.pallas import tpu as pltpu


def _round_up(v, m):
    return ((v + m - 1) // m) * m


def _pick_batch_tile(batch, f_pad, lane_cap=1024):
    """Largest divisor Bt of `batch` with a <= lane_cap-lane recurrence RHS,
    preferring choices that leave the grid even and >= 4 steps (so v7x can
    shard the parallel axis across its two TensorCores)."""
    cands = [bt for bt in range(1, batch + 1)
             if batch % bt == 0 and bt * f_pad <= lane_cap]
    if not cands:
        return 1

    def score(bt):
        steps = batch // bt
        return (steps >= 4 and steps % 2 == 0, steps % 2 == 0, bt)

    return max(cands, key=score)


# ----------------------------------------------------------------------------
# Pallas kernel: streamed diffusion recurrence + per-term fused projection.
# ----------------------------------------------------------------------------
def _gconv_kernel(x_ref, sup_ref, w_ref, b_ref, out_ref, acc_ref, *,
                  f_pad, o_pad, batch_tile, num_supports, max_step):
    # x_ref  : (1, Np, Bt*Fp) f32  — Bt batch elements, lane-packed per batch
    # sup_ref: (S, Np, Np)    bf16 — dense supports (grid-invariant block)
    # w_ref  : (M, Fp, Op)    bf16 — per-term projection weight slabs
    # b_ref  : (1, Bt*Op)     f32  — bias, pre-tiled across the Bt slabs
    # out_ref: (1, Np, Bt*Op) out_dtype
    # acc_ref: (Np, Bt*Op)    f32  VMEM scratch — projection accumulator
    acc_ref[...] = jnp.broadcast_to(b_ref[...], acc_ref.shape)

    def project(term_b16, m):
        # Project one diffusion term the moment it is produced: Bt independent
        # (Np, Fp) @ (Fp, Op) MXU matmuls with f32 accumulation.  These are
        # independent of the serial sup@x chain, so they hide its MRF/MRB
        # drain latency instead of being staged to VMEM and fused at the end.
        w_m = w_ref[m]                                       # (Fp, Op) bf16
        for b in range(batch_tile):
            seg = term_b16[:, b * f_pad:(b + 1) * f_pad]     # 128-aligned slab
            acc_ref[:, b * o_pad:(b + 1) * o_pad] += jnp.dot(
                seg, w_m, preferred_element_type=jnp.float32)

    x0 = x_ref[0]                                            # (Np, Bt*Fp) f32
    x0_b = x0.astype(jnp.bfloat16)
    project(x0_b, 0)

    # Diffusion recurrence — mirrors the PyTorch loop exactly, including the
    # carry of x0 across supports (`x1, x0 = x2, x1` leaks into the next
    # support's chain).  Only two activation terms are live at any time; the
    # wide (Bt*Fp-lane) RHS keeps the 256-wide MXU filled on v6e/v7x.
    p_x0, p_x0_b = x0, x0_b
    m = 1
    if max_step > 0:
        for s in range(num_supports):
            sup = sup_ref[s]                                 # (Np, Np) bf16
            p_x1 = jnp.dot(sup, p_x0_b, preferred_element_type=jnp.float32)
            p_x1_b = p_x1.astype(jnp.bfloat16)
            project(p_x1_b, m)
            m += 1
            for _ in range(2, max_step + 1):
                p_x2 = (2.0 * jnp.dot(sup, p_x1_b,
                                      preferred_element_type=jnp.float32)
                        - p_x0)                              # f32 epilogue (VPU)
                p_x2_b = p_x2.astype(jnp.bfloat16)
                project(p_x2_b, m)
                m += 1
                # PyTorch: x1, x0 = x2, x1   (x0 mutation is intentional)
                p_x1, p_x1_b, p_x0, p_x0_b = p_x2, p_x2_b, p_x1, p_x1_b

    # Padded node rows hold only the bias here (their diffusion terms are all
    # zero); the wrapper slices them off — do NOT consume the padded block
    # directly without masking those rows.  Lane-dense single store per step.
    out_ref[0] = acc_ref[...].astype(out_ref.dtype)


# ----------------------------------------------------------------------------
# Wrapper: layout plumbing (padding, batch packing, weight repack) + pallas_call.
# ----------------------------------------------------------------------------
def gconv_pallas(inputs, state, supports, weight, biases,
                 num_nodes, max_diffusion_step, output_dim,
                 batch_tile=None, out_dtype=jnp.float32):
    B = inputs.shape[0]
    N = num_nodes
    S = supports.shape[0]
    K = max_diffusion_step
    M = S * K + 1
    O = output_dim

    x_in = inputs.reshape(B, N, -1)
    st = state.reshape(B, N, -1)
    xs = jnp.concatenate([x_in, st], axis=2).astype(jnp.float32)   # (B, N, F)
    F = xs.shape[2]

    # Pad to TPU-friendly sizes (zero padding is exact: padded node rows and
    # padded feature lanes stay zero through the recurrence and projection).
    Np = _round_up(N, 128)    # node rows / sup@x contraction
    Fp = _round_up(F, 128)    # per-batch feature slab -> 128-aligned slots
    Op = _round_up(O, 128)    # lane-dense output stores

    if batch_tile is None:
        batch_tile = _pick_batch_tile(B, Fp)
    Bt = batch_tile
    assert B % Bt == 0, "batch_tile must divide the batch size"
    G = B // Bt               # grid steps

    # Lane-pack Bt batch elements per grid step: (G, Np, Bt*Fp) with per-batch
    # 128-aligned slabs.  Wrapper-side layout plumbing, not compute.
    x = jnp.pad(xs, ((0, 0), (0, Np - N), (0, Fp - F)))            # (B, Np, Fp)
    x = x.reshape(G, Bt, Np, Fp).transpose(0, 2, 1, 3).reshape(G, Np, Bt * Fp)

    # TODO(synk): torch.sparse.mm has no direct Pallas equivalent; the sparse
    # diffusion supports are materialized as dense (S, Np, Np) matrices here.
    sup = jnp.pad(supports.astype(jnp.float32),
                  ((0, 0), (0, Np - N), (0, Np - N))).astype(jnp.bfloat16)

    # PyTorch weight rows are ordered (f, m) with m fastest; re-pack into M
    # per-term (Fp, Op) slabs so every diffusion term can be projected and
    # accumulated as soon as it is produced.
    w = jnp.transpose(weight.astype(jnp.float32).reshape(F, M, O), (1, 0, 2))
    w = jnp.pad(w, ((0, 0), (0, Fp - F), (0, Op - O))).astype(jnp.bfloat16)

    bias = jnp.pad(biases.astype(jnp.float32).reshape(1, O),
                   ((0, 0), (0, Op - O)))
    bias = jnp.tile(bias, (1, Bt))                                  # (1, Bt*Op)

    kernel = functools.partial(_gconv_kernel, f_pad=Fp, o_pad=Op,
                               batch_tile=Bt, num_supports=S, max_step=K)

    # Generation-aware scoped-VMEM limit: working set + fixed headroom (no
    # double-hedging — the 2x factors below ARE the pipeline double buffers),
    # capped at ~40 MiB on 64-MiB-VMEM parts (v7x) and ~96 MiB on 128-MiB
    # parts (v5e / v6e).
    try:
        vmem_cap = int(pltpu.get_tpu_info().vmem_capacity_bytes)
    except Exception:
        vmem_cap = 128 * 1024 * 1024
    out_bytes = jnp.dtype(out_dtype).itemsize
    ws_bytes = (2 * Np * Bt * Fp * 4              # x block (double-buffered)
                + 2 * Np * Bt * Op * out_bytes    # out block (double-buffered)
                + 2 * S * Np * Np * 2             # supports (grid-invariant)
                + 2 * M * Fp * Op * 2             # weight slabs (grid-invariant)
                + 2 * Bt * Op * 4                 # bias
                + Np * Bt * Op * 4                # f32 accumulator scratch
                + Np * Bt * Fp * 12)              # live recurrence terms
    headroom = 8 * 1024 * 1024
    cap = (40 * 1024 * 1024 if vmem_cap <= 64 * 1024 * 1024
           else min(96 * 1024 * 1024, vmem_cap))
    vmem_limit = int(max(16 * 1024 * 1024, min(ws_bytes + headroom, cap)))

    out = pl.pallas_call(
        kernel,
        out_shape=jax.ShapeDtypeStruct((G, Np, Bt * Op), out_dtype),
        grid=(G,),
        in_specs=[
            pl.BlockSpec((1, Np, Bt * Fp), lambda g: (g, 0, 0)),   # x (Bt batches)
            pl.BlockSpec((S, Np, Np), lambda g: (0, 0, 0)),        # supports
            pl.BlockSpec((M, Fp, Op), lambda g: (0, 0, 0)),        # weight slabs
            pl.BlockSpec((1, Bt * Op), lambda g: (0, 0)),          # bias
        ],
        out_specs=pl.BlockSpec((1, Np, Bt * Op), lambda g: (g, 0, 0)),
        scratch_shapes=[pltpu.VMEM((Np, Bt * Op), jnp.float32)],
        compiler_params=pltpu.CompilerParams(
            dimension_semantics=("parallel",),
            vmem_limit_bytes=vmem_limit),
    )(x, sup, w, bias)

    # TODO(synk): for graphs where the dense (S, Np, Np) supports cannot stay
    # VMEM-resident (roughly Np >~ 1.5-2k on v7x's 64 MiB VMEM, ~2x that on
    # v5e/v6e), switch to a node-row tiling with a contraction grid axis over
    # Np and single-buffer the grid-invariant supports/weight blocks.
    out = out.reshape(G, Np, Bt, Op).transpose(0, 2, 1, 3).reshape(B, Np, Op)
    return out[:, :N, :O].astype(jnp.float32).reshape(B, N * O)     # (B, N*O)


# ----------------------------------------------------------------------------
# Pure-JAX reference mirroring the PyTorch forward variable-for-variable.
# matmul_dtype=bfloat16 matches the kernel's MXU input precision (f32 acc).
# ----------------------------------------------------------------------------
def gconv_ref(inputs, state, supports, weight, biases,
              num_nodes, max_diffusion_step, output_dim,
              matmul_dtype=jnp.float32):
    B = inputs.shape[0]
    N = num_nodes

    def mm(a, b):
        return jnp.dot(a.astype(matmul_dtype), b.astype(matmul_dtype),
                       preferred_element_type=jnp.float32)

    x_in = inputs.reshape(B, N, -1)
    st = state.reshape(B, N, -1)
    xs = jnp.concatenate([x_in, st], axis=2)
    F = xs.shape[2]
    x0 = jnp.transpose(xs, (1, 2, 0)).reshape(N, F * B)
    mats = [x0]
    if max_diffusion_step > 0:
        for s in range(supports.shape[0]):
            sup = supports[s]
            x1 = mm(sup, x0)
            mats.append(x1)
            for _ in range(2, max_diffusion_step + 1):
                x2 = 2.0 * mm(sup, x1) - x0
                mats.append(x2)
                x1, x0 = x2, x1          # same x0 mutation as the PyTorch module
    Mn = len(mats)
    x = jnp.stack(mats, 0).reshape(Mn, N, F, B)
    x = jnp.transpose(x, (3, 1, 2, 0)).reshape(B * N, F * Mn)
    x = mm(x, weight) + biases
    return x.reshape(B, N * output_dim)


if __name__ == "__main__":
    # Small, deterministic configuration.  batch=8 exercises batch packing:
    # Bt=2 batch elements per grid step -> 4 (even) grid steps, 256-lane RHS.
    num_nodes = 16
    input_dim = 4
    hid_dim = 4
    output_dim = 8
    max_diffusion_step = 2
    num_supports = 2
    batch = 8

    F = input_dim + hid_dim
    M = num_supports * max_diffusion_step + 1

    key = jax.random.PRNGKey(0)
    k_in, k_st, k_s0, k_s1, k_w = jax.random.split(key, 5)

    inputs = jax.random.normal(k_in, (batch, num_nodes * input_dim), jnp.float32)
    state = jax.random.normal(k_st, (batch, num_nodes * hid_dim), jnp.float32)

    # Dense, row-normalized "supports" (stand-ins for the sparse diffusion mats).
    def make_support(k):
        a = jax.random.uniform(k, (num_nodes, num_nodes), jnp.float32)
        return a / jnp.sum(a, axis=1, keepdims=True)

    supports = jnp.stack([make_support(k_s0), make_support(k_s1)], axis=0)

    # Parameters: xavier_normal_-like weight, constant(0.0) bias — deterministic.
    w_shape = (F * M, output_dim)
    std = (2.0 / (w_shape[0] + w_shape[1])) ** 0.5
    weight = std * jax.random.normal(k_w, w_shape, jnp.float32)
    biases = jnp.zeros((output_dim,), jnp.float32)

    out = gconv_pallas(inputs, state, supports, weight, biases,
                       num_nodes, max_diffusion_step, output_dim)
    out = jax.block_until_ready(out)
    assert out.shape == (batch, num_nodes * output_dim)

    # 1) Precision-matched reference (bf16 MXU inputs, f32 accumulation):
    #    tight check of the kernel's structure / PyTorch-exact semantics
    #    (including the x0 carry across supports).
    ref_bf16 = gconv_ref(inputs, state, supports, weight, biases,
                         num_nodes, max_diffusion_step, output_dim,
                         matmul_dtype=jnp.bfloat16)
    assert jnp.allclose(out, ref_bf16, atol=1e-2, rtol=1e-2)

    # 2) Exact-f32 PyTorch-equivalent reference: loose tolerance accounts for
    #    the deliberate bf16 MXU inputs inside the kernel.
    ref_f32 = gconv_ref(inputs, state, supports, weight, biases,
                        num_nodes, max_diffusion_step, output_dim,
                        matmul_dtype=jnp.float32)
    assert jnp.allclose(out, ref_f32, atol=1.5e-1, rtol=1.5e-1)

    print("KERNEL_OK")
</pallas_src>

<mosaic_0001>
module attributes {stable_mosaic.version = 11 : i64} {
  func.func @_gconv_kernel(%arg0: i32, %arg1: memref<1x128x256xf32, #tpu.memory_space<vmem>>, %arg2: memref<2x128x128xbf16, #tpu.memory_space<vmem>>, %arg3: memref<5x128x128xbf16, #tpu.memory_space<vmem>>, %arg4: memref<1x256xf32, #tpu.memory_space<vmem>>, %arg5: memref<1x128x256xf32, #tpu.memory_space<vmem>>, %arg6: memref<128x256xf32, #tpu.memory_space<vmem>>) attributes {dimension_semantics = [#tpu.dimension_semantics<parallel>], iteration_bounds = array<i64: 4>, scalar_prefetch = 0 : i64, scratch_operands = 1 : i64, tpu.core_type = #tpu.core_type<tc>, window_params = [{transform_indices = @transform_0, window_bounds = array<i64: 1, 128, 256>}, {pipeline_mode = #tpu.pipeline_mode<synchronous>, transform_indices = @transform_1, window_bounds = array<i64: 2, 128, 128>}, {pipeline_mode = #tpu.pipeline_mode<synchronous>, transform_indices = @transform_2, window_bounds = array<i64: 5, 128, 128>}, {pipeline_mode = #tpu.pipeline_mode<synchronous>, transform_indices = @transform_3, window_bounds = array<i64: 1, 256>}, {transform_indices = @transform_4, window_bounds = array<i64: 1, 128, 256>}]} {
    %c0 = arith.constant 0 : index
    %c0_0 = arith.constant 0 : index
    %0 = vector.load %arg4[%c0, %c0_0] : memref<1x256xf32, #tpu.memory_space<vmem>>, vector<1x256xf32>
    %1 = vector.shape_cast %0 : vector<1x256xf32> to vector<1x256xf32>
    %2 = vector.broadcast %1 : vector<1x256xf32> to vector<128x256xf32>
    %c0_1 = arith.constant 0 : index
    %c0_2 = arith.constant 0 : index
    %3 = vector.load %arg6[%c0_1, %c0_2] : memref<128x256xf32, #tpu.memory_space<vmem>>, vector<128x256xf32>
    tpu.vector_store %arg6[%c0_1, %c0_2], %2 {strides = array<i32>} : memref<128x256xf32, #tpu.memory_space<vmem>>, vector<128x256xf32>,
    %c0_3 = arith.constant 0 : index
    %c0_4 = arith.constant 0 : index
    %c0_5 = arith.constant 0 : index
    %4 = vector.load %arg1[%c0_3, %c0_4, %c0_5] : memref<1x128x256xf32, #tpu.memory_space<vmem>>, vector<1x128x256xf32>
    %5 = vector.shape_cast %4 : vector<1x128x256xf32> to vector<128x256xf32>
    %6 = arith.truncf %5 : vector<128x256xf32> to vector<128x256xbf16>
    %c0_6 = arith.constant 0 : index
    %c0_7 = arith.constant 0 : index
    %c0_8 = arith.constant 0 : index
    %7 = vector.load %arg3[%c0_6, %c0_7, %c0_8] : memref<5x128x128xbf16, #tpu.memory_space<vmem>>, vector<1x128x128xbf16>
    %8 = vector.shape_cast %7 : vector<1x128x128xbf16> to vector<128x128xbf16>
    %9 = vector.extract_strided_slice %6 {offsets = [0, 0], sizes = [128, 128], strides = [1, 1]} : vector<128x256xbf16> to vector<128x128xbf16>
    %c0_9 = arith.constant 0 : index
    %c0_10 = arith.constant 0 : index
    %10 = vector.load %arg6[%c0_9, %c0_10] : memref<128x256xf32, #tpu.memory_space<vmem>>, vector<128x128xf32>
    %cst = arith.constant dense<0.000000e+00> : vector<128x128xf32>
    %11 = tpu.matmul %9, %8, %cst {dimension_numbers = #tpu.dot_dimension_numbers<[1], [0], [0], [1], [0, 0, 1, 1], [], []>} : vector<128x128xbf16>, vector<128x128xbf16>, vector<128x128xf32> -> vector<128x128xf32>
    %12 = arith.addf %10, %11 : vector<128x128xf32>
    %c0_11 = arith.constant 0 : index
    %c0_12 = arith.constant 0 : index
    %13 = vector.load %arg6[%c0_11, %c0_12] : memref<128x256xf32, #tpu.memory_space<vmem>>, vector<128x128xf32>
    tpu.vector_store %arg6[%c0_11, %c0_12], %12 {strides = array<i32>} : memref<128x256xf32, #tpu.memory_space<vmem>>, vector<128x128xf32>,
    %14 = vector.extract_strided_slice %6 {offsets = [0, 128], sizes = [128, 128], strides = [1, 1]} : vector<128x256xbf16> to vector<128x128xbf16>
    %c0_13 = arith.constant 0 : index
    %c128 = arith.constant 128 : index
    %15 = vector.load %arg6[%c0_13, %c128] : memref<128x256xf32, #tpu.memory_space<vmem>>, vector<128x128xf32>
    %cst_14 = arith.constant dense<0.000000e+00> : vector<128x128xf32>
    %16 = tpu.matmul %14, %8, %cst_14 {dimension_numbers = #tpu.dot_dimension_numbers<[1], [0], [0], [1], [0, 0, 1, 1], [], []>} : vector<128x128xbf16>, vector<128x128xbf16>, vector<128x128xf32> -> vector<128x128xf32>
    %17 = arith.addf %15, %16 : vector<128x128xf32>
    %c0_15 = arith.constant 0 : index
    %c128_16 = arith.constant 128 : index
    %18 = vector.load %arg6[%c0_15, %c128_16] : memref<128x256xf32, #tpu.memory_space<vmem>>, vector<128x128xf32>
    tpu.vector_store %arg6[%c0_15, %c128_16], %17 {strides = array<i32>} : memref<128x256xf32, #tpu.memory_space<vmem>>, vector<128x128xf32>,
    %c0_17 = arith.constant 0 : index
    %c0_18 = arith.constant 0 : index
    %c0_19 = arith.constant 0 : index
    %19 = vector.load %arg2[%c0_17, %c0_18, %c0_19] : memref<2x128x128xbf16, #tpu.memory_space<vmem>>, vector<1x128x128xbf16>
    %20 = vector.shape_cast %19 : vector<1x128x128xbf16> to vector<128x128xbf16>
    %cst_20 = arith.constant dense<0.000000e+00> : vector<128x256xf32>
    %21 = tpu.matmul %20, %6, %cst_20 {dimension_numbers = #tpu.dot_dimension_numbers<[1], [0], [0], [1], [0, 0, 1, 1], [], []>} : vector<128x128xbf16>, vector<128x256xbf16>, vector<128x256xf32> -> vector<128x256xf32>
    %22 = arith.truncf %21 : vector<128x256xf32> to vector<128x256xbf16>
    %c1 = arith.constant 1 : index
    %c0_21 = arith.constant 0 : index
    %c0_22 = arith.constant 0 : index
    %23 = vector.load %arg3[%c1, %c0_21, %c0_22] : memref<5x128x128xbf16, #tpu.memory_space<vmem>>, vector<1x128x128xbf16>
    %24 = vector.shape_cast %23 : vector<1x128x128xbf16> to vector<128x128xbf16>
    %25 = vector.extract_strided_slice %22 {offsets = [0, 0], sizes = [128, 128], strides = [1, 1]} : vector<128x256xbf16> to vector<128x128xbf16>
    %c0_23 = arith.constant 0 : index
    %c0_24 = arith.constant 0 : index
    %26 = vector.load %arg6[%c0_23, %c0_24] : memref<128x256xf32, #tpu.memory_space<vmem>>, vector<128x128xf32>
    %cst_25 = arith.constant dense<0.000000e+00> : vector<128x128xf32>
    %27 = tpu.matmul %25, %24, %cst_25 {dimension_numbers = #tpu.dot_dimension_numbers<[1], [0], [0], [1], [0, 0, 1, 1], [], []>} : vector<128x128xbf16>, vector<128x128xbf16>, vector<128x128xf32> -> vector<128x128xf32>
    %28 = arith.addf %26, %27 : vector<128x128xf32>
    %c0_26 = arith.constant 0 : index
    %c0_27 = arith.constant 0 : index
    %29 = vector.load %arg6[%c0_26, %c0_27] : memref<128x256xf32, #tpu.memory_space<vmem>>, vector<128x128xf32>
    tpu.vector_store %arg6[%c0_26, %c0_27], %28 {strides = array<i32>} : memref<128x256xf32, #tpu.memory_space<vmem>>, vector<128x128xf32>,
    %30 = vector.extract_strided_slice %22 {offsets = [0, 128], sizes = [128, 128], strides = [1, 1]} : vector<128x256xbf16> to vector<128x128xbf16>
    %c0_28 = arith.constant 0 : index
    %c128_29 = arith.constant 128 : index
    %31 = vector.load %arg6[%c0_28, %c128_29] : memref<128x256xf32, #tpu.memory_space<vmem>>, vector<128x128xf32>
    %cst_30 = arith.constant dense<0.000000e+00> : vector<128x128xf32>
    %32 = tpu.matmul %30, %24, %cst_30 {dimension_numbers = #tpu.dot_dimension_numbers<[1], [0], [0], [1], [0, 0, 1, 1], [], []>} : vector<128x128xbf16>, vector<128x128xbf16>, vector<128x128xf32> -> vector<128x128xf32>
    %33 = arith.addf %31, %32 : vector<128x128xf32>
    %c0_31 = arith.constant 0 : index
    %c128_32 = arith.constant 128 : index
    %34 = vector.load %arg6[%c0_31, %c128_32] : memref<128x256xf32, #tpu.memory_space<vmem>>, vector<128x128xf32>
    tpu.vector_store %arg6[%c0_31, %c128_32], %33 {strides = array<i32>} : memref<128x256xf32, #tpu.memory_space<vmem>>, vector<128x128xf32>,
    %cst_33 = arith.constant dense<0.000000e+00> : vector<128x256xf32>
    %35 = tpu.matmul %20, %22, %cst_33 {dimension_numbers = #tpu.dot_dimension_numbers<[1], [0], [0], [1], [0, 0, 1, 1], [], []>} : vector<128x128xbf16>, vector<128x256xbf16>, vector<128x256xf32> -> vector<128x256xf32>
    %cst_34 = arith.constant 2.000000e+00 : f32
    %36 = vector.broadcast %cst_34 : f32 to vector<128x256xf32>
    %37 = arith.mulf %36, %35 : vector<128x256xf32>
    %38 = arith.subf %37, %5 : vector<128x256xf32>
    %39 = arith.truncf %38 : vector<128x256xf32> to vector<128x256xbf16>
    %c2 = arith.constant 2 : index
    %c0_35 = arith.constant 0 : index
    %c0_36 = arith.constant 0 : index
    %40 = vector.load %arg3[%c2, %c0_35, %c0_36] : memref<5x128x128xbf16, #tpu.memory_space<vmem>>, vector<1x128x128xbf16>
    %41 = vector.shape_cast %40 : vector<1x128x128xbf16> to vector<128x128xbf16>
    %42 = vector.extract_strided_slice %39 {offsets = [0, 0], sizes = [128, 128], strides = [1, 1]} : vector<128x256xbf16> to vector<128x128xbf16>
    %c0_37 = arith.constant 0 : index
    %c0_38 = arith.constant 0 : index
    %43 = vector.load %arg6[%c0_37, %c0_38] : memref<128x256xf32, #tpu.memory_space<vmem>>, vector<128x128xf32>
    %cst_39 = arith.constant dense<0.000000e+00> : vector<128x128xf32>
    %44 = tpu.matmul %42, %41, %cst_39 {dimension_numbers = #tpu.dot_dimension_numbers<[1], [0], [0], [1], [0, 0, 1, 1], [], []>} : vector<128x128xbf16>, vector<128x128xbf16>, vector<128x128xf32> -> vector<128x128xf32>
    %45 = arith.addf %43, %44 : vector<128x128xf32>
    %c0_40 = arith.constant 0 : index
    %c0_41 = arith.constant 0 : index
    %46 = vector.load %arg6[%c0_40, %c0_41] : memref<128x256xf32, #tpu.memory_space<vmem>>, vector<128x128xf32>
    tpu.vector_store %arg6[%c0_40, %c0_41], %45 {strides = array<i32>} : memref<128x256xf32, #tpu.memory_space<vmem>>, vector<128x128xf32>,
    %47 = vector.extract_strided_slice %39 {offsets = [0, 128], sizes = [128, 128], strides = [1, 1]} : vector<128x256xbf16> to vector<128x128xbf16>
    %c0_42 = arith.constant 0 : index
    %c128_43 = arith.constant 128 : index
    %48 = vector.load %arg6[%c0_42, %c128_43] : memref<128x256xf32, #tpu.memory_space<vmem>>, vector<128x128xf32>
    %cst_44 = arith.constant dense<0.000000e+00> : vector<128x128xf32>
    %49 = tpu.matmul %47, %41, %cst_44 {dimension_numbers = #tpu.dot_dimension_numbers<[1], [0], [0], [1], [0, 0, 1, 1], [], []>} : vector<128x128xbf16>, vector<128x128xbf16>, vector<128x128xf32> -> vector<128x128xf32>
    %50 = arith.addf %48, %49 : vector<128x128xf32>
    %c0_45 = arith.constant 0 : index
    %c128_46 = arith.constant 128 : index
    %51 = vector.load %arg6[%c0_45, %c128_46] : memref<128x256xf32, #tpu.memory_space<vmem>>, vector<128x128xf32>
    tpu.vector_store %arg6[%c0_45, %c128_46], %50 {strides = array<i32>} : memref<128x256xf32, #tpu.memory_space<vmem>>, vector<128x128xf32>,
    %c1_47 = arith.constant 1 : index
    %c0_48 = arith.constant 0 : index
    %c0_49 = arith.constant 0 : index
    %52 = vector.load %arg2[%c1_47, %c0_48, %c0_49] : memref<2x128x128xbf16, #tpu.memory_space<vmem>>, vector<1x128x128xbf16>
    %53 = vector.shape_cast %52 : vector<1x128x128xbf16> to vector<128x128xbf16>
    %cst_50 = arith.constant dense<0.000000e+00> : vector<128x256xf32>
    %54 = tpu.matmul %53, %22, %cst_50 {dimension_numbers = #tpu.dot_dimension_numbers<[1], [0], [0], [1], [0, 0, 1, 1], [], []>} : vector<128x128xbf16>, vector<128x256xbf16>, vector<128x256xf32> -> vector<128x256xf32>
    %55 = arith.truncf %54 : vector<128x256xf32> to vector<128x256xbf16>
    %c3 = arith.constant 3 : index
    %c0_51 = arith.constant 0 : index
    %c0_52 = arith.constant 0 : index
    %56 = vector.load %arg3[%c3, %c0_51, %c0_52] : memref<5x128x128xbf16, #tpu.memory_space<vmem>>, vector<1x128x128xbf16>
    %57 = vector.shape_cast %56 : vector<1x128x128xbf16> to vector<128x128xbf16>
    %58 = vector.extract_strided_slice %55 {offsets = [0, 0], sizes = [128, 128], strides = [1, 1]} : vector<128x256xbf16> to vector<128x128xbf16>
    %c0_53 = arith.constant 0 : index
    %c0_54 = arith.constant 0 : index
    %59 = vector.load %arg6[%c0_53, %c0_54] : memref<128x256xf32, #tpu.memory_space<vmem>>, vector<128x128xf32>
    %cst_55 = arith.constant dense<0.000000e+00> : vector<128x128xf32>
    %60 = tpu.matmul %58, %57, %cst_55 {dimension_numbers = #tpu.dot_dimension_numbers<[1], [0], [0], [1], [0, 0, 1, 1], [], []>} : vector<128x128xbf16>, vector<128x128xbf16>, vector<128x128xf32> -> vector<128x128xf32>
    %61 = arith.addf %59, %60 : vector<128x128xf32>
    %c0_56 = arith.constant 0 : index
    %c0_57 = arith.constant 0 : index
    %62 = vector.load %arg6[%c0_56, %c0_57] : memref<128x256xf32, #tpu.memory_space<vmem>>, vector<128x128xf32>
    tpu.vector_store %arg6[%c0_56, %c0_57], %61 {strides = array<i32>} : memref<128x256xf32, #tpu.memory_space<vmem>>, vector<128x128xf32>,
    %63 = vector.extract_strided_slice %55 {offsets = [0, 128], sizes = [128, 128], strides = [1, 1]} : vector<128x256xbf16> to vector<128x128xbf16>
    %c0_58 = arith.constant 0 : index
    %c128_59 = arith.constant 128 : index
    %64 = vector.load %arg6[%c0_58, %c128_59] : memref<128x256xf32, #tpu.memory_space<vmem>>, vector<128x128xf32>
    %cst_60 = arith.constant dense<0.000000e+00> : vector<128x128xf32>
    %65 = tpu.matmul %63, %57, %cst_60 {dimension_numbers = #tpu.dot_dimension_numbers<[1], [0], [0], [1], [0, 0, 1, 1], [], []>} : vector<128x128xbf16>, vector<128x128xbf16>, vector<128x128xf32> -> vector<128x128xf32>
    %66 = arith.addf %64, %65 : vector<128x128xf32>
    %c0_61 = arith.constant 0 : index
    %c128_62 = arith.constant 128 : index
    %67 = vector.load %arg6[%c0_61, %c128_62] : memref<128x256xf32, #tpu.memory_space<vmem>>, vector<128x128xf32>
    tpu.vector_store %arg6[%c0_61, %c128_62], %66 {strides = array<i32>} : memref<128x256xf32, #tpu.memory_space<vmem>>, vector<128x128xf32>,
    %cst_63 = arith.constant dense<0.000000e+00> : vector<128x256xf32>
    %68 = tpu.matmul %53, %55, %cst_63 {dimension_numbers = #tpu.dot_dimension_numbers<[1], [0], [0], [1], [0, 0, 1, 1], [], []>} : vector<128x128xbf16>, vector<128x256xbf16>, vector<128x256xf32> -> vector<128x256xf32>
    %cst_64 = arith.constant 2.000000e+00 : f32
    %69 = vector.broadcast %cst_64 : f32 to vector<128x256xf32>
    %70 = arith.mulf %69, %68 : vector<128x256xf32>
    %71 = arith.subf %70, %21 : vector<128x256xf32>
    %72 = arith.truncf %71 : vector<128x256xf32> to vector<128x256xbf16>
    %c4 = arith.constant 4 : index
    %c0_65 = arith.constant 0 : index
    %c0_66 = arith.constant 0 : index
    %73 = vector.load %arg3[%c4, %c0_65, %c0_66] : memref<5x128x128xbf16, #tpu.memory_space<vmem>>, vector<1x128x128xbf16>
    %74 = vector.shape_cast %73 : vector<1x128x128xbf16> to vector<128x128xbf16>
    %75 = vector.extract_strided_slice %72 {offsets = [0, 0], sizes = [128, 128], strides = [1, 1]} : vector<128x256xbf16> to vector<128x128xbf16>
    %c0_67 = arith.constant 0 : index
    %c0_68 = arith.constant 0 : index
    %76 = vector.load %arg6[%c0_67, %c0_68] : memref<128x256xf32, #tpu.memory_space<vmem>>, vector<128x128xf32>
    %cst_69 = arith.constant dense<0.000000e+00> : vector<128x128xf32>
    %77 = tpu.matmul %75, %74, %cst_69 {dimension_numbers = #tpu.dot_dimension_numbers<[1], [0], [0], [1], [0, 0, 1, 1], [], []>} : vector<128x128xbf16>, vector<128x128xbf16>, vector<128x128xf32> -> vector<128x128xf32>
    %78 = arith.addf %76, %77 : vector<128x128xf32>
    %c0_70 = arith.constant 0 : index
    %c0_71 = arith.constant 0 : index
    %79 = vector.load %arg6[%c0_70, %c0_71] : memref<128x256xf32, #tpu.memory_space<vmem>>, vector<128x128xf32>
    tpu.vector_store %arg6[%c0_70, %c0_71], %78 {strides = array<i32>} : memref<128x256xf32, #tpu.memory_space<vmem>>, vector<128x128xf32>,
    %80 = vector.extract_strided_slice %72 {offsets = [0, 128], sizes = [128, 128], strides = [1, 1]} : vector<128x256xbf16> to vector<128x128xbf16>
    %c0_72 = arith.constant 0 : index
    %c128_73 = arith.constant 128 : index
    %81 = vector.load %arg6[%c0_72, %c128_73] : memref<128x256xf32, #tpu.memory_space<vmem>>, vector<128x128xf32>
    %cst_74 = arith.constant dense<0.000000e+00> : vector<128x128xf32>
    %82 = tpu.matmul %80, %74, %cst_74 {dimension_numbers = #tpu.dot_dimension_numbers<[1], [0], [0], [1], [0, 0, 1, 1], [], []>} : vector<128x128xbf16>, vector<128x128xbf16>, vector<128x128xf32> -> vector<128x128xf32>
    %83 = arith.addf %81, %82 : vector<128x128xf32>
    %c0_75 = arith.constant 0 : index
    %c128_76 = arith.constant 128 : index
    %84 = vector.load %arg6[%c0_75, %c128_76] : memref<128x256xf32, #tpu.memory_space<vmem>>, vector<128x128xf32>
    tpu.vector_store %arg6[%c0_75, %c128_76], %83 {strides = array<i32>} : memref<128x256xf32, #tpu.memory_space<vmem>>, vector<128x128xf32>,
    %c0_77 = arith.constant 0 : index
    %c0_78 = arith.constant 0 : index
    %85 = vector.load %arg6[%c0_77, %c0_78] : memref<128x256xf32, #tpu.memory_space<vmem>>, vector<128x256xf32>
    %c0_79 = arith.constant 0 : index
    %c0_80 = arith.constant 0 : index
    %c0_81 = arith.constant 0 : index
    %86 = vector.load %arg5[%c0_79, %c0_80, %c0_81] : memref<1x128x256xf32, #tpu.memory_space<vmem>>, vector<1x128x256xf32>
    %87 = vector.shape_cast %86 : vector<1x128x256xf32> to vector<128x256xf32>
    %88 = vector.shape_cast %85 : vector<128x256xf32> to vector<1x128x256xf32>
    tpu.vector_store %arg5[%c0_79, %c0_80, %c0_81], %88 {strides = array<i32>} : memref<1x128x256xf32, #tpu.memory_space<vmem>>, vector<1x128x256xf32>,
    return
  }
  func.func @transform_0(%arg0: i32) -> (i32, i32, i32) {
    %c0_i32 = arith.constant 0 : i32
    %c0_i32_0 = arith.constant 0 : i32
    %c0_i32_1 = arith.constant 0 : i32
    return %arg0, %c0_i32, %c0_i32_0 : i32, i32, i32
  }
  func.func @transform_1(%arg0: i32) -> (i32, i32, i32) {
    %c0_i32 = arith.constant 0 : i32
    %c0_i32_0 = arith.constant 0 : i32
    %c0_i32_1 = arith.constant 0 : i32
    %c0_i32_2 = arith.constant 0 : i32
    return %c0_i32, %c0_i32_0, %c0_i32_1 : i32, i32, i32
  }
  func.func @transform_2(%arg0: i32) -> (i32, i32, i32) {
    %c0_i32 = arith.constant 0 : i32
    %c0_i32_0 = arith.constant 0 : i32
    %c0_i32_1 = arith.constant 0 : i32
    %c0_i32_2 = arith.constant 0 : i32
    return %c0_i32, %c0_i32_0, %c0_i32_1 : i32, i32, i32
  }
  func.func @transform_3(%arg0: i32) -> (i32, i32) {
    %c0_i32 = arith.constant 0 : i32
    %c0_i32_0 = arith.constant 0 : i32
    %c0_i32_1 = arith.constant 0 : i32
    return %c0_i32, %c0_i32_0 : i32, i32
  }
  func.func @transform_4(%arg0: i32) -> (i32, i32, i32) {
    %c0_i32 = arith.constant 0 : i32
    %c0_i32_0 = arith.constant 0 : i32
    %c0_i32_1 = arith.constant 0 : i32
    return %arg0, %c0_i32, %c0_i32_0 : i32, i32, i32
  }
}

</mosaic_0001>

<bundles_post_ra>
// kernel: tpu_custom_call.1
= control target key start
LH: loop header
LB: loop body
LE: loop exit
PB: predicated region body
PF: predicated region fallthrough
CT: control target
= control target key end

     0   :  { %9 = vsyncpa [#allocation4], 0  ;;  %s4996_s0 = inlined_call_operand.hbm [shape: f32[4,128,256], index: 0, kind: input, shape index: {}]   ;;  %s4997_s1 = inlined_call_operand.hbm [shape: bf16[2,128,128], index: 1, kind: input, shape index: {}]   ;;  %s4998_s2 = inlined_call_operand.hbm [shape: bf16[5,128,128], index: 2, kind: input, shape index: {}]   ;;  %s4999_s3 = inlined_call_operand.vmem [shape: f32[1,256], index: 3, kind: input, shape index: {}]   ;;  %s5000_s4 = inlined_call_operand.hbm [shape: f32[4,128,256], index: 4, kind: output, shape index: {}]  }
   0x1   :  { %11 = vsyncpa [#allocation4 + $0x1], 0 }
   0x2   :  { %12 = vsyncpa [#allocation7], 0 }
   0x3   :  { %13 = vsyncpa [#allocation5], 0 }
   0x4   :  { %15 = vsyncpa [#allocation5 + $0x1], 0  ;;  %s4095_s15 = smov 0   ;;  %s4097_s16 = smov 0  }
   0x5   :  { %s4099_s17 = smov 0   ;;  %s4101_s18 = smov 0  }
   0x6 LB: > { %s4116_s19 = sadd.s32 4294967295, %s4057_s18   ;;  %s3055_s20 = sadd.s32 4294967294, %s4057_s18   ;;  %s4057_s18 = sphi %s4101_s18, %s5127_s18   ;;  %s4053_s17 = sphi %s4099_s17, %s5126_s17   ;;  %s4049_s16 = sphi %s4097_s16, %s5125_s16   ;;  %s4045_s15 = sphi %s4095_s15, %s5124_s15  }
   0x7   : > { %p41_p0 = scmp.ne.s32.totalorder %s4049_s16, %s4045_s15  ;;  %p5001_p1 = scmp.eq.s32.totalorder %s4116_s19, 0 }
   0x8   : > { %p134_p3 = scmp.eq.s32.totalorder %s3055_s20, 3  ;;  %p3056_p5 = scmp.ge.s32.totalorder %s4057_s18, 1 }
   0x9   : > { %p4125_p4 = por %p5001_p1, %p41_p0  ;;  %p141_p7 = scmp.lt.s32.totalorder %s4057_s18, 5 }
   0xa   : > { %p4130_p6 = por %p134_p3, %p41_p0  ;;  %s4059_s24 = smov [#allocation6]  }
   0xb   : > { %s5041_s21 = scalar_select %p4125_p4, 1, 0 }
   0xc   : > { %s5042_s22 = scalar_select %p4130_p6, 1, 0 }
   0xd   : > { %p4135_p8 = pnand %p3056_p5, %p141_p7  ;;  %s153_s25 = sshll.u32 %s4059_s24, 4  ;;  %s154_s25 = int_to_ptr.vmem [resolvable:$true] %s153_s25 }
   0xe   : > { %s4060_s27 = smov [#allocation8]   ;;  %s3901_s5 = scalar_lea.hbm %s4997_s1, 2048 }
   0xf   : > { %s5043_s23 = scalar_select %p4135_p8, 1, 0 }
  0x10   : > { %p3783_p9 = pneg %p4135_p8  ;;  %s166_s28 = sshll.u32 %s4060_s27, 4  ;;  %s4147_s28 = int_to_ptr.vmem [resolvable:$true] %s166_s28 }
  0x11   : > { %p3902_p11 = scmp.ne.s32.totalorder %s4997_s1, %s3901_s5  ;;  %p3908_p3 = scmp.lt.u32.totalorder %s3901_s5, %s4997_s1 }
  0x12   : > { %p4143_p10 = pnand %p3783_p9, %p5001_p1 }
  0x14   : > { %p3903_p12 = pneg %p4143_p10 }
  0x16   : > { %p3904_p13 = pnand %p3903_p12, %p3902_p11 }
  0x18   : > { %p3905_p0 = pneg %p3904_p13 }
  0x1a   : > { %p3910_p5 = pnand %p3908_p3, %p3905_p0 }
  0x1c   : > { %3913 = shalt.err (!%p3910_p5)
}
  0x1d   : > { %s3914_s10 = scalar_lea.vmem %s154_s25, 2048  ;;  %p3922_p2 = scmp.lt.s32.totalorder %s154_s25, %s154_s25 }
  0x1e   : > { %p3915_p7 = scmp.ne.s32.totalorder %s154_s25, %s3914_s10  ;;  %p3923_p6 = scmp.lt.s32.totalorder %s3914_s10, %s3914_s10 }
  0x20   : > { %p3917_p9 = pnand %p3915_p7, %p3903_p12  ;;  %p3924_p4 = por %p3923_p6, %p3922_p2 }
  0x22   : > { %p3918_p1 = pneg %p3917_p9 }
  0x24   : > { %p3925_p8 = pnand %p3924_p4, %p3918_p1 }
  0x26   : > { %3928 = shalt.err (!%p3925_p8)
}
  0x27   : > { %s4061_s11 = smov 64   ;;  %s4062_s12 = smov 4  }
  0x28   : > { %3786 = dma.hbm_to_vmem [thread:$0]  (!%p4143_p10), %s4997_s1, 2048, %s154_s25, [#allocation7], %s4061_s11, %s4061_s11, %s4062_s12  }
  0x29   : > { %s3929_s27 = scalar_lea.hbm %s4998_s2, 5120 }
  0x2a   : > { %p3930_p11 = scmp.ne.s32.totalorder %s4998_s2, %s3929_s27  ;;  %p3936_p4 = scmp.lt.u32.totalorder %s3929_s27, %s4998_s2 }
  0x2c   : > { %p3932_p1 = pnand %p3930_p11, %p3903_p12 }
  0x2e   : > { %p3933_p2 = pneg %p3932_p1 }
  0x30   : > { %p3938_p6 = pnand %p3936_p4, %p3933_p2 }
  0x32   : > { %3941 = shalt.err (!%p3938_p6)
}
  0x33   : > { %s3942_s25 = scalar_lea.vmem %s4147_s28, 5120  ;;  %p3950_p3 = scmp.lt.s32.totalorder %s4147_s28, %s4147_s28 }
  0x34   : > { %p3943_p8 = scmp.ne.s32.totalorder %s4147_s28, %s3942_s25  ;;  %p3951_p5 = scmp.lt.s32.totalorder %s3942_s25, %s3942_s25 }
  0x36   : > { %p3945_p13 = pnand %p3943_p8, %p3903_p12  ;;  %p3952_p7 = por %p3951_p5, %p3950_p3 }
  0x38   : > { %p3946_p0 = pneg %p3945_p13 }
  0x3a   : > { %p3953_p9 = pnand %p3952_p7, %p3946_p0 }
  0x3c   : > { %3956 = shalt.err (!%p3953_p9)
}
  0x3d   : > { %3789 = dma.hbm_to_vmem [thread:$0]  (!%p4143_p10), %s4998_s2, 5120, %s4147_s28, [#allocation7], %s4061_s11, %s4061_s11, %s4062_s12  }
  0x3e   : > { %s4197_s9 = sadd.s32 1, %s4057_s18   ;;  %s28_s26 = sadd.s32 1, %s4053_s17 }
  0x3f   : > { %s25_s10 = ssub.s32 %s4057_s18, %s4197_s9  ;;  %p35_p12 = scmp.ne.s32.totalorder %s4053_s17, %s4049_s16 }
  0x40   : > { %p26_p11 = scmp.eq.s32.totalorder %s25_s10, 0  ;;  %p36_p1 = scmp.eq.s32.totalorder %s4057_s18, 0 }
  0x41   : > { %p5045_p2 = scmp.eq.s32.totalorder %s4116_s19, 3  ;;  %p3800_p6 = scmp.lt.s32.totalorder %s4057_s18, 4 }
  0x42   : > { %s4213_s14 = scalar_select %p26_p11, %s4053_s17, %s28_s26  }
  0x43   : > { %p4207_p4 = por %p5045_p2, %p35_p12  ;;  %p37_p8 = por %p36_p1, %p35_p12 }
  0x44   : > { %s183_s20 = sand.u32 1, %s4053_s17   ;;  %s3129_s28 = sshll.u32 %s4057_s18, 12 }
  0x45   : > { %s3060_s24 = sshll.u32 %s183_s20, 8  ;;  %s4220_s27 = scalar_lea.hbm %s4996_s0, %s3129_s28 }
  0x46   : > { %s187_s29 = scalar_lea.vmem [#allocation3], %s3060_s24  ;;  %p4224_p10 = pnand %p3800_p6, %p37_p8 }
  0x47   : > { %s194_s30 = sshll.u32 %s187_s29, 4  ;;  %s4228_s6 = scalar_lea.sflag [#allocation4], %s183_s20  ;;  %s4222_s30 = int_to_ptr.vmem [resolvable:$true] %s194_s30 }
  0x48   : > { %s3957_s25 = scalar_lea.hbm %s4220_s27, 4096  ;;  %p3959_p0 = pneg %p4224_p10 }
  0x49   : > { %p3958_p13 = scmp.ne.s32.totalorder %s4220_s27, %s3957_s25  ;;  %s3962_s26 = scalar_lea.hbm %s4996_s0, 16384 }
  0x4a   : > { %p3963_p7 = scmp.lt.u32.totalorder %s4220_s27, %s4996_s0  ;;  %p3964_p9 = scmp.lt.u32.totalorder %s3962_s26, %s3957_s25 }
  0x4b   : > { %p3960_p3 = pnand %p3959_p0, %p3958_p13  ;;  %p3966_p11 = scmp.lt.u32.totalorder %s3957_s25, %s4220_s27 }
  0x4c   : > { %p3965_p12 = por %p3964_p9, %p3963_p7 }
  0x4d   : > { %p3961_p5 = pneg %p3960_p3 }
  0x4e   : > { %p3967_p1 = por %p3966_p11, %p3965_p12 }
  0x50   : > { %p3968_p2 = pnand %p3967_p1, %p3961_p5 }
  0x52   : > { %3971 = shalt.err (!%p3968_p2)
}
  0x53   : > { %s3972_s20 = scalar_lea.vmem %s4222_s30, 4096  ;;  %s4063_s28 = smov [#allocation3]  }
  0x54   : > { %p3973_p6 = scmp.ne.s32.totalorder %s4222_s30, %s3972_s20  ;;  %s3977_s11 = sshll.u32 %s4063_s28, 4  ;;  %s3978_s11 = int_to_ptr.vmem [resolvable:$false] %s3977_s11 }
  0x55   : > { %s3979_s12 = scalar_lea.vmem %s3978_s11, 8192  ;;  %p3980_p3 = scmp.lt.s32.totalorder %s4222_s30, %s3978_s11 }
  0x56   : > { %p3975_p8 = pnand %p3973_p6, %p3959_p0  ;;  %p3981_p7 = scmp.lt.s32.totalorder %s3979_s12, %s3972_s20 }
  0x58   : > { %p3976_p13 = pneg %p3975_p8  ;;  %p3982_p9 = por %p3981_p7, %p3980_p3 }
  0x5a   : > { %p3983_p12 = pnand %p3982_p9, %p3976_p13 }
  0x5c   : > { %3986 = shalt.err (!%p3983_p12)
}
  0x5d   : > { %s4064_s29 = smov 256   ;;  %s4065_s25 = smov 16  }
  0x5e   : > { %3793 = dma.hbm_to_vmem [thread:$0]  (!%p4224_p10), %s4220_s27, 4096, %s4222_s30, %s4228_s6, %s4064_s29, %s4064_s29, %s4065_s25  }
  0x5f   : > { %p5048_p0 = scmp.ne.s32.totalorder %s5043_s23, 0 }
  0x61   : > { %206 = sbr.rel (%p5048_p0) target bundleno = 1531 (0x5fb), region = 36 }
  0x68   : > { %s4259_s7 = sand.u32 1, %s4049_s16   ;;  %p5049_p5 = scmp.ne.s32.totalorder %s5041_s21, 0 }
  0x69   : > { %s3064_s8 = sshll.u32 %s4259_s7, 8  ;;  %s209_s26 = scalar_lea.sflag [#allocation4], %s4259_s7 }
  0x6a   : > { %s4265_s10 = scalar_lea.vmem [#allocation3], %s3064_s8 }
  0x6b   : > { %4032 = dma.done.wait (%p5049_p5), %s209_s26, 4096  }
  0x6c   : > { %4034 = vsyncadd (%p5049_p5), %s209_s26, 4294963200  ;;  %p5050_p10 = scmp.eq.s32.totalorder %s4116_s19, 0 }
  0x6e   : > { %4036 = dma.done.wait (%p5050_p10), [#allocation7], 7168   ;;  %p5051_p11 = pmov %p5050_p10 }
  0x6f   : > { %v3845_v0 = vld [vmem:[#allocation8] sm:$0xff]   ;;  %v3846_v1 = vld [vmem:[#allocation8 + $0x8] sm:$0xff]   ;;  %v3847_v2 = vld [vmem:[#allocation8 + $0x10] sm:$0xff]   ;;  %v5004_v62 = vmov 0   ;;  %s4883_s27 = scalar_lea.vmem [#allocation9], %s3064_s8  ;;  %s3130_s30 = sshll.u32 %s4116_s19, 12 }
  0x70   : > { %4038 = vsyncadd (%p5051_p11), [#allocation7], 4294960128  ;;  %3291 = vmatprep.subr.bf16.mxu0 %v3845_v0  ;;  %3323 = vmatprep.subr.bf16.mxu1 %v3845_v0  ;;  %v3848_v3 = vld [vmem:[#allocation8 + $0x18] sm:$0xff]   ;;  %v4276_v4 = vld [vmem:[%s4265_s10] sm:$0xff]  ;;  %s2963_s5 = sshll.u32 %s4883_s27, 4  ;;  %s4945_s24 = scalar_lea.hbm %s5000_s4, %s3130_s30  ;;  %s4947_s5 = int_to_ptr.vmem [resolvable:$true] %s2963_s5 }
  0x71   : > { %3292 = vmatpush3.bf16.msra.mxu0 %v3845_v0  ;;  %3324 = vmatpush3.bf16.msra.mxu1 %v3845_v0  ;;  %v4279_v5 = vld [vmem:[%s4265_s10 + $0x10] sm:$0xff]  ;;  %v4284_v7 = vld [vmem:[%s4265_s10 + $0x8] sm:$0xff]  ;;  %v4287_v8 = vld [vmem:[%s4265_s10 + $0x18] sm:$0xff]  ;;  %s2950_s20 = scalar_lea.sflag [#allocation5], %s4259_s7  ;;  %s3987_s28 = scalar_lea.vmem %s4947_s5, 4096 }
  0x72   : > { %3293 = vmatprep.subr.bf16.mxu0 %v3846_v1  ;;  %3325 = vmatprep.subr.bf16.mxu1 %v3846_v1  ;;  %v322_v6 = vpack.c.bf16 %v4279_v5, %v4276_v4  ;;  %v323_v9 = vpack.c.bf16 %v4287_v8, %v4284_v7  ;;  %v3849_v10 = vld [vmem:[#allocation8 + $0x20] sm:$0xff]   ;;  %v3850_v11 = vld [vmem:[#allocation8 + $0x28] sm:$0xff]   ;;  %v3851_v12 = vld [vmem:[#allocation8 + $0x30] sm:$0xff]   ;;  %p3988_p1 = scmp.ne.s32.totalorder %s4947_s5, %s3987_s28  ;;  %s4067_s11 = smov [#allocation9]  }
  0x73   : > { %v3852_v13 = vld [vmem:[#allocation8 + $0x38] sm:$0xff]   ;;  %v4292_v14 = vld [vmem:[%s4265_s10 + $0x20] sm:$0xff]  ;;  %v4295_v15 = vld [vmem:[%s4265_s10 + $0x30] sm:$0xff]  ;;  %s3991_s12 = sshll.u32 %s4067_s11, 4  ;;  %s3992_s12 = int_to_ptr.vmem [resolvable:$false] %s3991_s12 }
  0x74   : > { %3307 = vmatprep.mubr.bf16.mxu0 %v322_v6  ;;  %3339 = vmatprep.mubr.bf16.mxu1 %v323_v9  ;;  %v4298_v16 = vld [vmem:[%s4265_s10 + $0x28] sm:$0xff]  ;;  %v4301_v17 = vld [vmem:[%s4265_s10 + $0x38] sm:$0xff]  ;;  %v4304_v18 = vld [vmem:[%s4265_s10 + $0x40] sm:$0xff]  ;;  %v324_v21 = vpack.c.bf16 %v4295_v15, %v4292_v14  ;;  %p3989_p2 = pnand %p3988_p1, %p4207_p4  ;;  %s3993_s29 = scalar_lea.vmem %s3992_s12, 8192 }
  0x75   : > { %3294 = vmatpush3.bf16.msra.mxu0 %v3846_v1  ;;  %3326 = vmatpush3.bf16.msra.mxu1 %v3846_v1  ;;  %v4307_v19 = vld [vmem:[%s4265_s10 + $0x50] sm:$0xff]  ;;  %v4309_v20 = vld [vmem:[#allocation8 + $0x40] sm:$0xff]   ;;  %v4314_v22 = vld [vmem:[%s4265_s10 + $0x48] sm:$0xff]  ;;  %v325_v25 = vpack.c.bf16 %v4301_v17, %v4298_v16  ;;  %p3994_p8 = scmp.lt.s32.totalorder %s4947_s5, %s3992_s12  ;;  %p3995_p13 = scmp.lt.s32.totalorder %s3993_s29, %s3987_s28 }
  0x76   : > { %3295 = vmatprep.subr.bf16.mxu0 %v3847_v2  ;;  %3327 = vmatprep.subr.bf16.mxu1 %v3847_v2  ;;  %v326_v23 = vpack.c.bf16 %v4307_v19, %v4304_v18  ;;  %v4319_v24 = vld [vmem:[%s4265_s10 + $0x58] sm:$0xff]  ;;  %v4323_v26 = vld [vmem:[#allocation8 + $0x48] sm:$0xff]   ;;  %v4326_v27 = vld [vmem:[%s4265_s10 + $0x60] sm:$0xff]  ;;  %p3990_p6 = pneg %p3989_p2 }
  0x77   : > { %v4329_v28 = vld [vmem:[%s4265_s10 + $0x70] sm:$0xff]  ;;  %v4333_v29 = vld [vmem:[%s4265_s10 + $0x80] sm:$0xff]  ;;  %v327_v31 = vpack.c.bf16 %v4319_v24, %v4314_v22  ;;  %v4341_v32 = vld [vmem:[%s4265_s10 + $0x68] sm:$0xff]  ;;  %p3996_p3 = por %p3995_p13, %p3994_p8 }
  0x78   : > { %v4336_v30 = vld [vmem:[%s4265_s10 + $0x90] sm:$0xff]  ;;  %v4344_v33 = vld [vmem:[%s4265_s10 + $0x78] sm:$0xff]  ;;  %v328_v35 = vpack.c.bf16 %v4329_v28, %v4326_v27  ;;  %v4352_v36 = vld [vmem:[%s4265_s10 + $0x88] sm:$0xff] }
  0x79   : > { %3296 = vmatpush3.bf16.msra.mxu0 %v3847_v2  ;;  %3328 = vmatpush3.bf16.msra.mxu1 %v3847_v2  ;;  %v4346_v34 = vld [vmem:[#allocation8 + $0x50] sm:$0xff]   ;;  %v4355_v37 = vld [vmem:[%s4265_s10 + $0x98] sm:$0xff]  ;;  %v330_v38 = vpack.c.bf16 %v4336_v30, %v4333_v29  ;;  %v329_v39 = vpack.c.bf16 %v4344_v33, %v4341_v32  ;;  %v4365_v41 = vld [vmem:[%s4265_s10 + $0xa0] sm:$0xff]  ;;  %p3997_p7 = pnand %p3996_p3, %p3990_p6 }
  0x7a   : > { %3297 = vmatprep.subr.bf16.mxu0 %v3848_v3  ;;  %3329 = vmatprep.subr.bf16.mxu1 %v3848_v3  ;;  %v4362_v40 = vld [vmem:[#allocation8 + $0x58] sm:$0xff]   ;;  %v4368_v42 = vld [vmem:[%s4265_s10 + $0xb0] sm:$0xff]  ;;  %v4372_v43 = vld [vmem:[%s4265_s10 + $0xc0] sm:$0xff]  ;;  %v331_v45 = vpack.c.bf16 %v4355_v37, %v4352_v36 }
  0x7b   : > { %v4375_v44 = vld [vmem:[%s4265_s10 + $0xd0] sm:$0xff]  ;;  %v4381_v46 = vld [vmem:[%s4265_s10 + $0xa8] sm:$0xff]  ;;  %v4384_v47 = vld [vmem:[%s4265_s10 + $0xb8] sm:$0xff]  ;;  %v332_v49 = vpack.c.bf16 %v4368_v42, %v4365_v41 }
  0x7c   : > { %v3865_v48 = vld [vmem:[#allocation8 + $0x60] sm:$0xff]   ;;  %v4390_v50 = vld [vmem:[%s4265_s10 + $0xc8] sm:$0xff]  ;;  %v4393_v51 = vld [vmem:[%s4265_s10 + $0xd8] sm:$0xff]  ;;  %v334_v52 = vpack.c.bf16 %v4375_v44, %v4372_v43  ;;  %v333_v53 = vpack.c.bf16 %v4384_v47, %v4381_v46 }
  0x7d   : > { %3298 = vmatpush3.bf16.msra.mxu0 %v3848_v3  ;;  %3330 = vmatpush3.bf16.msra.mxu1 %v3848_v3  ;;  %v3866_v54 = vld [vmem:[#allocation8 + $0x68] sm:$0xff]   ;;  %v4401_v55 = vld [vmem:[%s4265_s10 + $0xe0] sm:$0xff]  ;;  %v4404_v56 = vld [vmem:[%s4265_s10 + $0xf0] sm:$0xff]  ;;  %v335_v57 = vpack.c.bf16 %v4393_v51, %v4390_v50 }
  0x7e   : > { %3299 = vmatprep.subr.bf16.mxu0 %v3849_v10  ;;  %3331 = vmatprep.subr.bf16.mxu1 %v3849_v10  ;;  %5052 = vst [vmem:[#allocation13_spill] sm:$0xff] %v4401_v55  ;;  %5053 = vst [vmem:[#allocation14_spill] sm:$0xff] %v4404_v56  ;;  %v4410_v58 = vld [vmem:[%s4265_s10 + $0xe8] sm:$0xff]  ;;  %v4413_v59 = vld [vmem:[%s4265_s10 + $0xf8] sm:$0xff]  ;;  %v336_v60 = vpack.c.bf16 %v4404_v56, %v4401_v55  ;;  %v5087_v55 = vmov 0  }
  0x7f   : > { %5054 = vst [vmem:[#allocation15_spill] sm:$0xff] %v4410_v58  ;;  %5055 = vst [vmem:[#allocation16_spill] sm:$0xff] %v4413_v59  ;;  %v337_v61 = vpack.c.bf16 %v4413_v59, %v4410_v58  ;;  %v4420_v63 = vld [vmem:[#allocation6] sm:$0xff]   ;;  %v4427_v0 = vld [vmem:[#allocation6 + $0x8] sm:$0xff]  }
  0x80   : > { %v4435_v1 = vld [vmem:[#allocation6 + $0x10] sm:$0xff]   ;;  %v4440_v2 = vld [vmem:[#allocation6 + $0x18] sm:$0xff]   ;;  %v4444_v3 = vld [vmem:[#allocation6 + $0x20] sm:$0xff]  }
  0x81   : > { %3300 = vmatpush3.bf16.msra.mxu0 %v3849_v10  ;;  %3332 = vmatpush3.bf16.msra.mxu1 %v3849_v10  ;;  %v4456_v10 = vld [vmem:[#allocation6 + $0x38] sm:$0xff]  }
  0x82   : > { %3301 = vmatprep.subr.bf16.mxu0 %v3850_v11  ;;  %3333 = vmatprep.subr.bf16.mxu1 %v3850_v11 }
  0x85   : > { %3302 = vmatpush3.bf16.msra.mxu0 %v3850_v11  ;;  %3334 = vmatpush3.bf16.msra.mxu1 %v3850_v11  ;;  %v3867_v11 = vld [vmem:[#allocation8 + $0x70] sm:$0xff]  }
  0x86   : > { %3303 = vmatprep.subr.bf16.mxu0 %v3851_v12  ;;  %3335 = vmatprep.subr.bf16.mxu1 %v3851_v12 }
  0x89   : > { %3304 = vmatpush3.bf16.msra.mxu0 %v3851_v12  ;;  %3336 = vmatpush3.bf16.msra.mxu1 %v3851_v12  ;;  %v3868_v12 = vld [vmem:[#allocation8 + $0x78] sm:$0xff]  }
  0x8a   : > { %3305 = vmatprep.subr.bf16.mxu0 %v3852_v13  ;;  %3337 = vmatprep.subr.bf16.mxu1 %v3852_v13 }
  0x8d   : > { %3306 = vmatpush3.bf16.msra.mxu0 %v3852_v13  ;;  %3338 = vmatpush3.bf16.msra.mxu1 %v3852_v13  ;;  %v4459_v13 = vld [vmem:[#allocation8 + $0x80] sm:$0xff]  }
  0x8e   : > { %756 = vmatprep.subr.bf16.mxu0 %v323_v9  ;;  %3387 = vmatprep.subr.bf16.mxu1 %v4309_v20  ;;  %v4452_v9 = vld [vmem:[#allocation6 + $0x30] sm:$0xff]  }
  0x90   : > { %3308 = vmatmul.mubr.bf16.vlgmr.msra.gmra.mrb[0].mxu0 %v324_v21  ;;  %3340 = vmatmul.mubr.bf16.vlgmr.msra.gmra.mrb[0].mxu1 %v325_v25 }
  0x91   : > { %757 = vmatpush1.bf16.msra.mxu0 %v322_v6  ;;  %3311 = vmatprep.mubr.bf16.mxu0 %v326_v23  ;;  %v4448_v6 = vld [vmem:[#allocation6 + $0x28] sm:$0xff]  }
  0x92   : > { %758 = vmatprep.subr.bf16.mxu0 %v325_v25  ;;  %3388 = vmatpush3.bf16.msra.mxu1 %v4309_v20 }
  0x93   : > { %3343 = vmatprep.mubr.bf16.mxu1 %v327_v31  ;;  %3389 = vmatprep.subr.bf16.mxu1 %v4323_v26 }
  0x95   : > { %759 = vmatpush1.bf16.msra.mxu0 %v324_v21 }
  0x96   : > { %760 = vmatprep.subr.bf16.mxu0 %v327_v31  ;;  %3390 = vmatpush3.bf16.msra.mxu1 %v4323_v26 }
  0x97   : > { %3391 = vmatprep.subr.bf16.mxu1 %v4346_v34 }
  0x98   : > { %3312 = vmatmul.mubr.bf16.gmra.mrb[4].mxu0 %v328_v35  ;;  %3344 = vmatmul.mubr.bf16.gmra.mrb[4].mxu1 %v329_v39 }
  0x99   : > { %761 = vmatpush1.bf16.msra.mxu0 %v326_v23  ;;  %3315 = vmatprep.mubr.bf16.mxu0 %v330_v38 }
  0x9a   : > { %762 = vmatprep.subr.bf16.mxu0 %v329_v39  ;;  %3392 = vmatpush3.bf16.msra.mxu1 %v4346_v34 }
  0x9b   : > { %3347 = vmatprep.mubr.bf16.mxu1 %v331_v45  ;;  %3393 = vmatprep.subr.bf16.mxu1 %v4362_v40 }
  0x9d   : > { %763 = vmatpush1.bf16.msra.mxu0 %v328_v35 }
  0x9e   : > { %764 = vmatprep.subr.bf16.mxu0 %v331_v45  ;;  %3394 = vmatpush3.bf16.msra.mxu1 %v4362_v40  ;;  %v4493_v45 = vld [vmem:[#allocation8 + $0x88] sm:$0xff]  }
  0x9f   : > { %3395 = vmatprep.subr.bf16.mxu1 %v3865_v48 }
  0xa0   : > { %3316 = vmatmul.mubr.bf16.gmra.mrb[8].mxu0 %v332_v49  ;;  %3348 = vmatmul.mubr.bf16.gmra.mrb[8].mxu1 %v333_v53 }
  0xa1   : > { %765 = vmatpush1.bf16.msra.mxu0 %v330_v38  ;;  %3319 = vmatprep.mubr.bf16.mxu0 %v334_v52 }
  0xa2   : > { %766 = vmatprep.subr.bf16.mxu0 %v333_v53  ;;  %3396 = vmatpush3.bf16.msra.mxu1 %v3865_v48 }
  0xa3   : > { %3351 = vmatprep.mubr.bf16.mxu1 %v335_v57  ;;  %3397 = vmatprep.subr.bf16.mxu1 %v3866_v54 }
  0xa5   : > { %767 = vmatpush1.bf16.msra.mxu0 %v332_v49  ;;  %v4504_v49 = vld [vmem:[#allocation8 + $0x90] sm:$0xff]  }
  0xa6   : > { %768 = vmatprep.subr.bf16.mxu0 %v335_v57  ;;  %3398 = vmatpush3.bf16.msra.mxu1 %v3866_v54 }
  0xa7   : > { %3399 = vmatprep.subr.bf16.mxu1 %v3867_v11 }
  0xa8   : > { %3320 = vmatmul.mubr.bf16.gmra.mrb[12].mxu0 %v336_v60  ;;  %3352 = vmatmul.mubr.bf16.gmra.mrb[12].mxu1 %v337_v61 }
  0xa9   : > { %769 = vmatpush1.bf16.msra.mxu0 %v334_v52  ;;  %788 = vmatprep.mubr.bf16.mxu0 %v5004_v62 }
  0xaa   : > { %770 = vmatprep.subr.bf16.mxu0 %v337_v61  ;;  %3400 = vmatpush3.bf16.msra.mxu1 %v3867_v11  ;;  %v4522_v61 = vld [vmem:[#allocation8 + $0x98] sm:$0xff]  }
  0xab   : > { %3401 = vmatprep.subr.bf16.mxu1 %v3868_v12 }
  0xad   : > { %771 = vmatpush1.bf16.msra.mxu0 %v336_v60 }
  0xae   : > { %3355 = vmatprep.subr.bf16.mxu0 %v4309_v20  ;;  %3402 = vmatpush3.bf16.msra.mxu1 %v3868_v12 }
  0xb0   : > { %789 = vmatmul.mubr.bf16.vlgmr.msra.gmra.mrb[16].mxu0 %v4420_v63 }
  0xb1   : > { %798 = vmatprep.mubr.bf16.mxu0 %v5004_v62  ;;  %3356 = vmatpush3.bf16.msra.mxu0 %v4309_v20 }
  0xb2   : > { %3357 = vmatprep.subr.bf16.mxu0 %v4323_v26 }
  0xb5   : > { %3358 = vmatpush3.bf16.msra.mxu0 %v4323_v26 }
  0xb6   : > { %3359 = vmatprep.subr.bf16.mxu0 %v4346_v34 }
  0xb8   : > { %799 = vmatmul.mubr.bf16.gmra.mrb[20].mxu0 %v4427_v0 }
  0xb9   : > { %808 = vmatprep.mubr.bf16.mxu0 %v5004_v62  ;;  %3360 = vmatpush3.bf16.msra.mxu0 %v4346_v34 }
  0xba   : > { %3361 = vmatprep.subr.bf16.mxu0 %v4362_v40 }
  0xbd   : > { %3362 = vmatpush3.bf16.msra.mxu0 %v4362_v40 }
  0xbe   : > { %3363 = vmatprep.subr.bf16.mxu0 %v3865_v48 }
  0xc0   : > { %809 = vmatmul.mubr.bf16.gmra.mrb[24].mxu0 %v4435_v1 }
  0xc1   : > { %818 = vmatprep.mubr.bf16.mxu0 %v5004_v62  ;;  %3364 = vmatpush3.bf16.msra.mxu0 %v3865_v48 }
  0xc2   : > { %3365 = vmatprep.subr.bf16.mxu0 %v3866_v54 }
  0xc5   : > { %3366 = vmatpush3.bf16.msra.mxu0 %v3866_v54 }
  0xc6   : > { %3367 = vmatprep.subr.bf16.mxu0 %v3867_v11 }
  0xc8   : > { %819 = vmatmul.mubr.bf16.gmra.mrb[28].mxu0 %v4440_v2 }
  0xc9   : > { %828 = vmatprep.mubr.bf16.mxu0 %v5004_v62  ;;  %3368 = vmatpush3.bf16.msra.mxu0 %v3867_v11 }
  0xca   : > { %3369 = vmatprep.subr.bf16.mxu0 %v3868_v12 }
  0xcd   : > { %3370 = vmatpush3.bf16.msra.mxu0 %v3868_v12  ;;  %v4533_v12 = vld [vmem:[#allocation8 + $0xa0] sm:$0xff]  }
  0xce   : > { %3419 = vmatprep.subr.bf16.mxu0 %v4459_v13 }
  0xd0   : > { %829 = vmatmul.mubr.bf16.gmra.mrb[32].mxu0 %v4444_v3 }
  0xd1   : > { %838 = vmatprep.mubr.bf16.mxu0 %v5004_v62 }
  0xd8   : > { %839 = vmatmul.mubr.bf16.gmra.mrb[36].mxu0 %v4448_v6 }
  0xd9   : > { %848 = vmatprep.mubr.bf16.mxu0 %v5004_v62 }
  0xe0   : > { %849 = vmatmul.mubr.bf16.gmra.mrb[40].mxu0 %v4452_v9 }
  0xe1   : > { %858 = vmatprep.mubr.bf16.mxu0 %v5004_v62 }
  0xe8   : > { %859 = vmatmul.mubr.bf16.gmra.mrb[44].mxu0 %v4456_v10 }
 0x183   : > { %v4462_v20 = vpop.f32.mrb[16].mxu0 }
 0x184   : > { %5056 = vst [vmem:[#allocation17_spill] sm:$0xff] %v4462_v20  ;;  %v4464_v21 = vpop.f32.mrb[17].mxu0 }
 0x185   : > { %5057 = vst [vmem:[#allocation18_spill] sm:$0xff] %v4464_v21  ;;  %v4466_v23 = vpop.f32.mrb[18].mxu0 }
 0x186   : > { %5058 = vst [vmem:[#allocation19_spill] sm:$0xff] %v4466_v23  ;;  %v4470_v25 = vpack.c.bf16 %v4466_v23, %v4462_v20  ;;  %v4472_v26 = vpop.f32.mrb[19].mxu0 }
 0x187   : > { %5059 = vst [vmem:[#allocation20_spill] sm:$0xff] %v4472_v26  ;;  %v4476_v31 = vpack.c.bf16 %v4472_v26, %v4464_v21  ;;  %v4578_v26 = vld [vmem:[#allocation8 + $0xb8] sm:$0xff]  }
 0x188   : > { %3371 = vmatprep.mubr.bf16.mxu0 %v4470_v25 }
 0x189   : > { %3403 = vmatprep.mubr.bf16.mxu1 %v4476_v31  ;;  %1240 = vmatprep.subr.bf16.mxu1 %v4476_v31 }
 0x18b   : > { %v4481_v34 = vpop.f32.mrb[20].mxu0 }
 0x18c   : > { %5060 = vst [vmem:[#allocation21_spill] sm:$0xff] %v4481_v34  ;;  %v4483_v35 = vpop.f32.mrb[21].mxu0 }
 0x18d   : > { %5061 = vst [vmem:[#allocation22_spill] sm:$0xff] %v4483_v35  ;;  %v4485_v38 = vpop.f32.mrb[22].mxu0 }
 0x18e   : > { %5062 = vst [vmem:[#allocation23_spill] sm:$0xff] %v4485_v38  ;;  %v4489_v39 = vpack.c.bf16 %v4485_v38, %v4481_v34  ;;  %v4491_v40 = vpop.f32.mrb[23].mxu0 }
 0x18f   : > { %5063 = vst [vmem:[#allocation24_spill] sm:$0xff] %v4491_v40  ;;  %v4497_v48 = vpack.c.bf16 %v4491_v40, %v4483_v35  ;;  %v4550_v40 = vld [vmem:[#allocation8 + $0xa8] sm:$0xff]  }
 0x190   : > { %3372 = vmatmul.mubr.bf16.vlgmr.msra.gmra.mrb[0].mxu0 %v4489_v39 }
 0x191   : > { %3420 = vmatpush3.bf16.msra.mxu0 %v4459_v13  ;;  %3404 = vmatmul.mubr.bf16.vlgmr.msra.gmra.mrb[0].mxu1 %v4497_v48 }
 0x192   : > { %1241 = vmatpush1.bf16.msra.mxu1 %v4470_v25  ;;  %3421 = vmatprep.subr.bf16.mxu0 %v4493_v45 }
 0x193   : > { %1242 = vmatprep.subr.bf16.mxu1 %v4497_v48  ;;  %v4507_v52 = vpop.f32.mrb[24].mxu0 }
 0x194   : > { %5064 = vst [vmem:[#allocation25_spill] sm:$0xff] %v4507_v52  ;;  %v4509_v53 = vpop.f32.mrb[25].mxu0 }
 0x195   : > { %5065 = vst [vmem:[#allocation26_spill] sm:$0xff] %v4509_v53  ;;  %3422 = vmatpush3.bf16.msra.mxu0 %v4493_v45  ;;  %v4512_v54 = vpop.f32.mrb[26].mxu0 }
 0x196   : > { %5066 = vst [vmem:[#allocation27_spill] sm:$0xff] %v4512_v54  ;;  %v4516_v57 = vpack.c.bf16 %v4512_v54, %v4507_v52  ;;  %1243 = vmatpush1.bf16.msra.mxu1 %v4489_v39  ;;  %v4519_v60 = vpop.f32.mrb[27].mxu0  ;;  %3423 = vmatprep.subr.bf16.mxu0 %v4504_v49 }
 0x197   : > { %5067 = vst [vmem:[#allocation28_spill] sm:$0xff] %v4519_v60  ;;  %v4526_v11 = vpack.c.bf16 %v4519_v60, %v4509_v53 }
 0x198   : > { %3375 = vmatprep.mubr.bf16.mxu0 %v4516_v57 }
 0x199   : > { %3424 = vmatpush3.bf16.msra.mxu0 %v4504_v49  ;;  %3407 = vmatprep.mubr.bf16.mxu1 %v4526_v11 }
 0x19a   : > { %1244 = vmatprep.subr.bf16.mxu1 %v4526_v11  ;;  %3425 = vmatprep.subr.bf16.mxu0 %v4522_v61 }
 0x19b   : > { %1245 = vmatpush1.bf16.msra.mxu1 %v4516_v57  ;;  %v4536_v62 = vpop.f32.mrb[28].mxu0 }
 0x19c   : > { %5068 = vst [vmem:[#allocation29_spill] sm:$0xff] %v4536_v62  ;;  %v4538_v54 = vpop.f32.mrb[29].mxu0 }
 0x19d   : > { %5069 = vst [vmem:[#allocation30_spill] sm:$0xff] %v4538_v54  ;;  %3426 = vmatpush3.bf16.msra.mxu0 %v4522_v61  ;;  %v4541_v60 = vpop.f32.mrb[30].mxu0 }
 0x19e   : > { %5070 = vst [vmem:[#allocation31_spill] sm:$0xff] %v4541_v60  ;;  %v4545_v53 = vpack.c.bf16 %v4541_v60, %v4536_v62  ;;  %v4547_v52 = vpop.f32.mrb[31].mxu0  ;;  %3427 = vmatprep.subr.bf16.mxu0 %v4533_v12  ;;  %v4561_v60 = vld [vmem:[#allocation8 + $0xb0] sm:$0xff]  }
 0x19f   : > { %5071 = vst [vmem:[#allocation32_spill] sm:$0xff] %v4547_v52  ;;  %v4554_v38 = vpack.c.bf16 %v4547_v52, %v4538_v54 }
 0x1a0   : > { %3376 = vmatmul.mubr.bf16.gmra.mrb[4].mxu0 %v4545_v53 }
 0x1a1   : > { %3428 = vmatpush3.bf16.msra.mxu0 %v4533_v12  ;;  %3408 = vmatmul.mubr.bf16.gmra.mrb[4].mxu1 %v4554_v38 }
 0x1a2   : > { %1246 = vmatprep.subr.bf16.mxu1 %v4554_v38  ;;  %3429 = vmatprep.subr.bf16.mxu0 %v4550_v40 }
 0x1a3   : > { %1247 = vmatpush1.bf16.msra.mxu1 %v4545_v53  ;;  %v4564_v62 = vpop.f32.mrb[32].mxu0 }
 0x1a4   : > { %5072 = vst [vmem:[#allocation33_spill] sm:$0xff] %v4564_v62  ;;  %v4566_v35 = vpop.f32.mrb[33].mxu0 }
 0x1a5   : > { %5073 = vst [vmem:[#allocation34_spill] sm:$0xff] %v4566_v35  ;;  %3430 = vmatpush3.bf16.msra.mxu0 %v4550_v40  ;;  %v4569_v52 = vpop.f32.mrb[34].mxu0 }
 0x1a6   : > { %5074 = vst [vmem:[#allocation35_spill] sm:$0xff] %v4569_v52  ;;  %v4573_v54 = vpack.c.bf16 %v4569_v52, %v4564_v62  ;;  %v4575_v34 = vpop.f32.mrb[35].mxu0  ;;  %3431 = vmatprep.subr.bf16.mxu0 %v4561_v60 }
 0x1a7   : > { %5075 = vst [vmem:[#allocation36_spill] sm:$0xff] %v4575_v34  ;;  %v4582_v23 = vpack.c.bf16 %v4575_v34, %v4566_v35 }
 0x1a8   : > { %3379 = vmatprep.mubr.bf16.mxu0 %v4573_v54 }
 0x1a9   : > { %3432 = vmatpush3.bf16.msra.mxu0 %v4561_v60  ;;  %3411 = vmatprep.mubr.bf16.mxu1 %v4582_v23 }
 0x1aa   : > { %1248 = vmatprep.subr.bf16.mxu1 %v4582_v23  ;;  %3433 = vmatprep.subr.bf16.mxu0 %v4578_v26 }
 0x1ab   : > { %1249 = vmatpush1.bf16.msra.mxu1 %v4573_v54  ;;  %v4590_v52 = vpop.f32.mrb[36].mxu0 }
 0x1ac   : > { %5076 = vst [vmem:[#allocation37_spill] sm:$0xff] %v4590_v52  ;;  %v4592_v62 = vpop.f32.mrb[37].mxu0 }
 0x1ad   : > { %5077 = vst [vmem:[#allocation38_spill] sm:$0xff] %v4592_v62  ;;  %3434 = vmatpush3.bf16.msra.mxu0 %v4578_v26  ;;  %v4595_v34 = vpop.f32.mrb[38].mxu0 }
 0x1ae   : > { %5078 = vst [vmem:[#allocation39_spill] sm:$0xff] %v4595_v34  ;;  %v4599_v35 = vpack.c.bf16 %v4595_v34, %v4590_v52  ;;  %1853 = vmatprep.subr.bf16.mxu0 %v4476_v31  ;;  %v4602_v21 = vpop.f32.mrb[39].mxu0 }
 0x1af   : > { %5079 = vst [vmem:[#allocation40_spill] sm:$0xff] %v4602_v21  ;;  %v4606_v20 = vpack.c.bf16 %v4602_v21, %v4592_v62 }
 0x1b0   : > { %3380 = vmatmul.mubr.bf16.gmra.mrb[8].mxu0 %v4599_v35 }
 0x1b1   : > { %3412 = vmatmul.mubr.bf16.gmra.mrb[8].mxu1 %v4606_v20  ;;  %1250 = vmatprep.subr.bf16.mxu1 %v4606_v20 }
 0x1b2   : > { %1251 = vmatpush1.bf16.msra.mxu1 %v4599_v35 }
 0x1b3   : > { %v4612_v59 = vpop.f32.mrb[40].mxu0 }
 0x1b4   : > { %5080 = vst [vmem:[#allocation41_spill] sm:$0xff] %v4612_v59  ;;  %v4614_v34 = vpop.f32.mrb[41].mxu0 }
 0x1b5   : > { %5081 = vst [vmem:[#allocation42_spill] sm:$0xff] %v4614_v34  ;;  %v4616_v52 = vpop.f32.mrb[42].mxu0 }
 0x1b6   : > { %5082 = vst [vmem:[#allocation43_spill] sm:$0xff] %v4616_v52  ;;  %v4620_v31 = vpack.c.bf16 %v4616_v52, %v4612_v59  ;;  %v4622_v21 = vpop.f32.mrb[43].mxu0 }
 0x1b7   : > { %5083 = vst [vmem:[#allocation44_spill] sm:$0xff] %v4622_v21  ;;  %v4626_v62 = vpack.c.bf16 %v4622_v21, %v4614_v34 }
 0x1b8   : > { %3383 = vmatprep.mubr.bf16.mxu0 %v4620_v31 }
 0x1b9   : > { %3415 = vmatprep.mubr.bf16.mxu1 %v4626_v62  ;;  %1252 = vmatprep.subr.bf16.mxu1 %v4626_v62 }
 0x1ba   : > { %1253 = vmatpush1.bf16.msra.mxu1 %v4620_v31 }
 0x1bb   : > { %v4632_v58 = vpop.f32.mrb[44].mxu0 }
 0x1bc   : > { %v4634_v56 = vpop.f32.mrb[45].mxu0 }
 0x1bd   : > { %5084 = vst [vmem:[#allocation45_spill] sm:$0xff] %v4634_v56  ;;  %v4636_v52 = vpop.f32.mrb[46].mxu0 }
 0x1be   : > { %5085 = vst [vmem:[#allocation46_spill] sm:$0xff] %v4636_v52  ;;  %v4640_v59 = vpack.c.bf16 %v4636_v52, %v4632_v58  ;;  %v4642_v21 = vpop.f32.mrb[47].mxu0 }
 0x1bf   : > { %5086 = vst [vmem:[#allocation47_spill] sm:$0xff] %v4642_v21  ;;  %v4646_v34 = vpack.c.bf16 %v4642_v21, %v4634_v56 }
 0x1c0   : > { %3384 = vmatmul.mubr.bf16.gmra.mrb[12].mxu0 %v4640_v59 }
 0x1c1   : > { %3416 = vmatmul.mubr.bf16.gmra.mrb[12].mxu1 %v4646_v34  ;;  %1254 = vmatprep.subr.bf16.mxu1 %v4646_v34 }
 0x1c2   : > { %1255 = vmatpush1.bf16.msra.mxu1 %v4640_v59  ;;  %1272 = vmatprep.mubr.bf16.mxu1 %v5087_v55 }
 0x1c3   : > { %3451 = vmatprep.subr.bf16.mxu1 %v4459_v13 }
 0x1c9   : > { %1273 = vmatmul.mubr.bf16.vlgmr.msra.gmra.mrb[16].mxu1 %v4420_v63 }
 0x1ca   : > { %1282 = vmatprep.mubr.bf16.mxu1 %v5087_v55  ;;  %3452 = vmatpush3.bf16.msra.mxu1 %v4459_v13 }
 0x1cb   : > { %3453 = vmatprep.subr.bf16.mxu1 %v4493_v45 }
 0x1ce   : > { %3454 = vmatpush3.bf16.msra.mxu1 %v4493_v45 }
 0x1cf   : > { %3455 = vmatprep.subr.bf16.mxu1 %v4504_v49 }
 0x1d1   : > { %1283 = vmatmul.mubr.bf16.gmra.mrb[20].mxu1 %v4427_v0 }
 0x1d2   : > { %1292 = vmatprep.mubr.bf16.mxu1 %v5087_v55  ;;  %3456 = vmatpush3.bf16.msra.mxu1 %v4504_v49 }
 0x1d3   : > { %3457 = vmatprep.subr.bf16.mxu1 %v4522_v61 }
 0x1d6   : > { %3458 = vmatpush3.bf16.msra.mxu1 %v4522_v61 }
 0x1d7   : > { %3459 = vmatprep.subr.bf16.mxu1 %v4533_v12 }
 0x1d9   : > { %1293 = vmatmul.mubr.bf16.gmra.mrb[24].mxu1 %v4435_v1 }
 0x1da   : > { %1302 = vmatprep.mubr.bf16.mxu1 %v5087_v55  ;;  %3460 = vmatpush3.bf16.msra.mxu1 %v4533_v12 }
 0x1db   : > { %3461 = vmatprep.subr.bf16.mxu1 %v4550_v40 }
 0x1de   : > { %3462 = vmatpush3.bf16.msra.mxu1 %v4550_v40 }
 0x1df   : > { %3463 = vmatprep.subr.bf16.mxu1 %v4561_v60 }
 0x1e1   : > { %1303 = vmatmul.mubr.bf16.gmra.mrb[28].mxu1 %v4440_v2  ;;  %v4684_v2 = vld [vmem:[#allocation8 + $0xc0] sm:$0xff]  }
 0x1e2   : > { %1312 = vmatprep.mubr.bf16.mxu1 %v5087_v55  ;;  %3464 = vmatpush3.bf16.msra.mxu1 %v4561_v60 }
 0x1e3   : > { %3465 = vmatprep.subr.bf16.mxu1 %v4578_v26 }
 0x1e6   : > { %3466 = vmatpush3.bf16.msra.mxu1 %v4578_v26 }
 0x1e7   : > { %3515 = vmatprep.subr.bf16.mxu1 %v4684_v2 }
 0x1e9   : > { %1313 = vmatmul.mubr.bf16.gmra.mrb[32].mxu1 %v4444_v3 }
 0x1ea   : > { %1322 = vmatprep.mubr.bf16.mxu1 %v5087_v55 }
 0x1f1   : > { %1323 = vmatmul.mubr.bf16.gmra.mrb[36].mxu1 %v4448_v6 }
 0x1f2   : > { %1332 = vmatprep.mubr.bf16.mxu1 %v5087_v55 }
 0x1f9   : > { %1333 = vmatmul.mubr.bf16.gmra.mrb[40].mxu1 %v4452_v9 }
 0x1fa   : > { %1342 = vmatprep.mubr.bf16.mxu1 %v5087_v55 }
 0x201   : > { %1343 = vmatmul.mubr.bf16.gmra.mrb[44].mxu1 %v4456_v10 }
 0x29c   : > { %v1274_v63 = vpop.f32.mrb[16].mxu1 }
 0x29d   : > { %v1353_v0 = vmul.f32 2.0, %v1274_v63  ;;  %v1276_v1 = vpop.f32.mrb[17].mxu1 }
 0x29e   : > { %v1354_v13 = vmul.f32 2.0, %v1276_v1  ;;  %v1278_v26 = vpop.f32.mrb[18].mxu1 }
 0x29f   : > { %v1355_v3 = vmul.f32 2.0, %v1278_v26  ;;  %v1280_v40 = vpop.f32.mrb[19].mxu1  ;;  %v1385_v45 = vsub.f32 %v1353_v0, %v4276_v4 }
 0x2a0   : > { %v1356_v6 = vmul.f32 2.0, %v1280_v40  ;;  %v1386_v49 = vsub.f32 %v1354_v13, %v4284_v7 }
 0x2a1   : > { %v1387_v9 = vsub.f32 %v1355_v3, %v4279_v5 }
 0x2a2   : > { %v1388_v10 = vsub.f32 %v1356_v6, %v4287_v8  ;;  %v4695_v6 = vld [vmem:[#allocation8 + $0xc8] sm:$0xff]  }
 0x2a3   : > { %v1417_v60 = vpack.c.bf16 %v1387_v9, %v1385_v45 }
 0x2a4   : > { %v1284_v61 = vpop.f32.mrb[20].mxu1  ;;  %v1418_v12 = vpack.c.bf16 %v1388_v10, %v1386_v49 }
 0x2a5   : > { %v1357_v63 = vmul.f32 2.0, %v1284_v61  ;;  %v1286_v21 = vpop.f32.mrb[21].mxu1  ;;  %3435 = vmatprep.mubr.bf16.mxu0 %v1417_v60 }
 0x2a6   : > { %v1358_v1 = vmul.f32 2.0, %v1286_v21  ;;  %v1288_v26 = vpop.f32.mrb[22].mxu1  ;;  %3467 = vmatprep.mubr.bf16.mxu1 %v1418_v12  ;;  %v4711_v12 = vld [vmem:[#allocation8 + $0xd8] sm:$0xff]  }
 0x2a7   : > { %v1359_v52 = vmul.f32 2.0, %v1288_v26  ;;  %v1290_v56 = vpop.f32.mrb[23].mxu1  ;;  %v1389_v4 = vsub.f32 %v1357_v63, %v4292_v14 }
 0x2a8   : > { %v1360_v40 = vmul.f32 2.0, %v1290_v56  ;;  %v1390_v7 = vsub.f32 %v1358_v1, %v4298_v16  ;;  %v4717_v1 = vld [vmem:[#allocation8 + $0xe0] sm:$0xff]  }
 0x2a9   : > { %v1391_v5 = vsub.f32 %v1359_v52, %v4295_v15 }
 0x2aa   : > { %v1392_v8 = vsub.f32 %v1360_v40, %v4301_v17  ;;  %v4701_v17 = vld [vmem:[#allocation8 + $0xd0] sm:$0xff]  }
 0x2ab   : > { %v1419_v0 = vpack.c.bf16 %v1391_v5, %v1389_v4 }
 0x2ac   : > { %v1420_v13 = vpack.c.bf16 %v1392_v8, %v1390_v7  ;;  %v1294_v3 = vpop.f32.mrb[24].mxu1  ;;  %v4727_v8 = vld [vmem:[#allocation8 + $0xe8] sm:$0xff]  }
 0x2ad   : > { %v1361_v45 = vmul.f32 2.0, %v1294_v3  ;;  %v1296_v21 = vpop.f32.mrb[25].mxu1  ;;  %3436 = vmatmul.mubr.bf16.vlgmr.msra.gmra.mrb[0].mxu0 %v1419_v0 }
 0x2ae   : > { %v1362_v9 = vmul.f32 2.0, %v1296_v21  ;;  %1854 = vmatpush1.bf16.msra.mxu0 %v4470_v25  ;;  %v1298_v56 = vpop.f32.mrb[26].mxu1  ;;  %3468 = vmatmul.mubr.bf16.vlgmr.msra.gmra.mrb[0].mxu1 %v1420_v13 }
 0x2af   : > { %v1363_v14 = vmul.f32 2.0, %v1298_v56  ;;  %1855 = vmatprep.subr.bf16.mxu0 %v4497_v48  ;;  %v1300_v15 = vpop.f32.mrb[27].mxu1  ;;  %3516 = vmatpush3.bf16.msra.mxu1 %v4684_v2  ;;  %v1393_v52 = vsub.f32 %v1361_v45, %v4304_v18 }
 0x2b0   : > { %v1364_v16 = vmul.f32 2.0, %v1300_v15  ;;  %3517 = vmatprep.subr.bf16.mxu1 %v4695_v6  ;;  %v1394_v10 = vsub.f32 %v1362_v9, %v4314_v22 }
 0x2b1   : > { %v1395_v49 = vsub.f32 %v1363_v14, %v4307_v19 }
 0x2b2   : > { %v1396_v25 = vsub.f32 %v1364_v16, %v4319_v24  ;;  %1856 = vmatpush1.bf16.msra.mxu0 %v4489_v39 }
 0x2b3   : > { %1857 = vmatprep.subr.bf16.mxu0 %v4526_v11  ;;  %v1421_v48 = vpack.c.bf16 %v1395_v49, %v1393_v52  ;;  %3518 = vmatpush3.bf16.msra.mxu1 %v4695_v6 }
 0x2b4   : > { %v1304_v60 = vpop.f32.mrb[28].mxu1  ;;  %v1422_v61 = vpack.c.bf16 %v1396_v25, %v1394_v10  ;;  %3519 = vmatprep.subr.bf16.mxu1 %v4701_v17 }
 0x2b5   : > { %v1365_v18 = vmul.f32 2.0, %v1304_v60  ;;  %v1306_v63 = vpop.f32.mrb[29].mxu1  ;;  %3439 = vmatprep.mubr.bf16.mxu0 %v1421_v48 }
 0x2b6   : > { %v1366_v19 = vmul.f32 2.0, %v1306_v63  ;;  %1858 = vmatpush1.bf16.msra.mxu0 %v4516_v57  ;;  %v1308_v22 = vpop.f32.mrb[30].mxu1  ;;  %3471 = vmatprep.mubr.bf16.mxu1 %v1422_v61 }
 0x2b7   : > { %v1367_v24 = vmul.f32 2.0, %v1308_v22  ;;  %1859 = vmatprep.subr.bf16.mxu0 %v4554_v38  ;;  %v1310_v39 = vpop.f32.mrb[31].mxu1  ;;  %3520 = vmatpush3.bf16.msra.mxu1 %v4701_v17  ;;  %v1397_v26 = vsub.f32 %v1365_v18, %v4326_v27 }
 0x2b8   : > { %v1368_v11 = vmul.f32 2.0, %v1310_v39  ;;  %3521 = vmatprep.subr.bf16.mxu1 %v4711_v12  ;;  %v1398_v4 = vsub.f32 %v1366_v19, %v4341_v32 }
 0x2b9   : > { %v1399_v40 = vsub.f32 %v1367_v24, %v4329_v28 }
 0x2ba   : > { %v1400_v57 = vsub.f32 %v1368_v11, %v4344_v33  ;;  %1860 = vmatpush1.bf16.msra.mxu0 %v4545_v53 }
 0x2bb   : > { %1861 = vmatprep.subr.bf16.mxu0 %v4582_v23  ;;  %v1423_v38 = vpack.c.bf16 %v1399_v40, %v1397_v26  ;;  %3522 = vmatpush3.bf16.msra.mxu1 %v4711_v12 }
 0x2bc   : > { %v1314_v5 = vpop.f32.mrb[32].mxu1  ;;  %v1424_v7 = vpack.c.bf16 %v1400_v57, %v1398_v4  ;;  %3523 = vmatprep.subr.bf16.mxu1 %v4717_v1 }
 0x2bd   : > { %v1369_v27 = vmul.f32 2.0, %v1314_v5  ;;  %v1316_v0 = vpop.f32.mrb[33].mxu1  ;;  %3440 = vmatmul.mubr.bf16.gmra.mrb[4].mxu0 %v1423_v38  ;;  %v5088_v38 = vld [vmem:[#allocation13_spill] sm:$0xff]  ;;  %v5089_v5 = vld [vmem:[#allocation14_spill] sm:$0xff] }
 0x2be   : > { %v1370_v28 = vmul.f32 2.0, %v1316_v0  ;;  %1862 = vmatpush1.bf16.msra.mxu0 %v4573_v54  ;;  %v1318_v32 = vpop.f32.mrb[34].mxu1  ;;  %3472 = vmatmul.mubr.bf16.gmra.mrb[4].mxu1 %v1424_v7  ;;  %v5090_v7 = vld [vmem:[#allocation15_spill] sm:$0xff] }
 0x2bf   : > { %v1371_v33 = vmul.f32 2.0, %v1318_v32  ;;  %1863 = vmatprep.subr.bf16.mxu0 %v4606_v20  ;;  %v1320_v23 = vpop.f32.mrb[35].mxu1  ;;  %3524 = vmatpush3.bf16.msra.mxu1 %v4717_v1  ;;  %v1401_v13 = vsub.f32 %v1369_v27, %v4333_v29  ;;  %v5091_v27 = vld [vmem:[#allocation16_spill] sm:$0xff]  ;;  %v4757_v32 = vld [vmem:[#allocation6 + $0x40] sm:$0xff]  }
 0x2c0   : > { %v1372_v53 = vmul.f32 2.0, %v1320_v23  ;;  %3525 = vmatprep.subr.bf16.mxu1 %v4727_v8  ;;  %v1402_v45 = vsub.f32 %v1370_v28, %v4352_v36  ;;  %v4771_v23 = vld [vmem:[#allocation6 + $0x50] sm:$0xff]  }
 0x2c1   : > { %v1403_v3 = vsub.f32 %v1371_v33, %v4336_v30  ;;  %v4763_v33 = vld [vmem:[#allocation6 + $0x48] sm:$0xff]  }
 0x2c2   : > { %v1404_v21 = vsub.f32 %v1372_v53, %v4355_v37  ;;  %1864 = vmatpush1.bf16.msra.mxu0 %v4599_v35  ;;  %v3892_v53 = vld [vmem:[#allocation8 + $0xf8] sm:$0xff]  }
 0x2c3   : > { %1865 = vmatprep.subr.bf16.mxu0 %v4626_v62  ;;  %v1425_v54 = vpack.c.bf16 %v1403_v3, %v1401_v13  ;;  %3526 = vmatpush3.bf16.msra.mxu1 %v4727_v8  ;;  %v4799_v13 = vld [vmem:[#allocation8 + $0x100] sm:$0xff]  }
 0x2c4   : > { %v1324_v20 = vpop.f32.mrb[36].mxu1  ;;  %v1426_v9 = vpack.c.bf16 %v1404_v21, %v1402_v45 }
 0x2c5   : > { %v1373_v56 = vmul.f32 2.0, %v1324_v20  ;;  %v1326_v14 = vpop.f32.mrb[37].mxu1  ;;  %3443 = vmatprep.mubr.bf16.mxu0 %v1425_v54 }
 0x2c6   : > { %v1374_v15 = vmul.f32 2.0, %v1326_v14  ;;  %1866 = vmatpush1.bf16.msra.mxu0 %v4620_v31  ;;  %v1328_v29 = vpop.f32.mrb[38].mxu1  ;;  %3475 = vmatprep.mubr.bf16.mxu1 %v1426_v9 }
 0x2c7   : > { %v1375_v30 = vmul.f32 2.0, %v1328_v29  ;;  %1867 = vmatprep.subr.bf16.mxu0 %v4646_v34  ;;  %v1330_v36 = vpop.f32.mrb[39].mxu1  ;;  %v1405_v62 = vsub.f32 %v1373_v56, %v4365_v41 }
 0x2c8   : > { %v1376_v37 = vmul.f32 2.0, %v1330_v36  ;;  %v1406_v16 = vsub.f32 %v1374_v15, %v4381_v46  ;;  %v4802_v36 = vld [vmem:[#allocation8 + $0x108] sm:$0xff]  }
 0x2c9   : > { %v1407_v35 = vsub.f32 %v1375_v30, %v4368_v42 }
 0x2ca   : > { %v1408_v52 = vsub.f32 %v1376_v37, %v4384_v47  ;;  %1868 = vmatpush1.bf16.msra.mxu0 %v4640_v59 }
 0x2cb   : > { %v1427_v49 = vpack.c.bf16 %v1407_v35, %v1405_v62  ;;  %3483 = vmatprep.subr.bf16.mxu0 %v4684_v2  ;;  %v4806_v62 = vld [vmem:[#allocation8 + $0x110] sm:$0xff]  }
 0x2cc   : > { %v1334_v31 = vpop.f32.mrb[40].mxu1  ;;  %v1428_v10 = vpack.c.bf16 %v1408_v52, %v1406_v16 }
 0x2cd   : > { %v1377_v25 = vmul.f32 2.0, %v1334_v31  ;;  %v1336_v48 = vpop.f32.mrb[41].mxu1  ;;  %3444 = vmatmul.mubr.bf16.gmra.mrb[8].mxu0 %v1427_v49 }
 0x2ce   : > { %v1378_v34 = vmul.f32 2.0, %v1336_v48  ;;  %v1338_v60 = vpop.f32.mrb[42].mxu1  ;;  %3476 = vmatmul.mubr.bf16.gmra.mrb[8].mxu1 %v1428_v10 }
 0x2cf   : > { %v1379_v41 = vmul.f32 2.0, %v1338_v60  ;;  %v1340_v61 = vpop.f32.mrb[43].mxu1  ;;  %v1409_v46 = vsub.f32 %v1377_v25, %v4372_v43  ;;  %v4810_v25 = vld [vmem:[#allocation8 + $0x118] sm:$0xff]  }
 0x2d0   : > { %v1380_v42 = vmul.f32 2.0, %v1340_v61  ;;  %v1410_v59 = vsub.f32 %v1378_v34, %v4390_v50 }
 0x2d1   : > { %v1411_v47 = vsub.f32 %v1379_v41, %v4375_v44 }
 0x2d2   : > { %v1412_v18 = vsub.f32 %v1380_v42, %v4393_v51 }
 0x2d3   : > { %v1429_v63 = vpack.c.bf16 %v1411_v47, %v1409_v46 }
 0x2d4   : > { %v1344_v19 = vpop.f32.mrb[44].mxu1  ;;  %v1430_v22 = vpack.c.bf16 %v1412_v18, %v1410_v59 }
 0x2d5   : > { %v1381_v24 = vmul.f32 2.0, %v1344_v19  ;;  %v1346_v39 = vpop.f32.mrb[45].mxu1  ;;  %3447 = vmatprep.mubr.bf16.mxu0 %v1429_v63 }
 0x2d6   : > { %v1382_v11 = vmul.f32 2.0, %v1346_v39  ;;  %v1348_v26 = vpop.f32.mrb[46].mxu1  ;;  %3479 = vmatprep.mubr.bf16.mxu1 %v1430_v22 }
 0x2d7   : > { %v1383_v40 = vmul.f32 2.0, %v1348_v26  ;;  %v1350_v4 = vpop.f32.mrb[47].mxu1  ;;  %v1413_v43 = vsub.f32 %v1381_v24, %v5088_v38 }
 0x2d8   : > { %v1384_v57 = vmul.f32 2.0, %v1350_v4  ;;  %v1414_v50 = vsub.f32 %v1382_v11, %v5090_v7 }
 0x2d9   : > { %v1415_v44 = vsub.f32 %v1383_v40, %v5089_v5 }
 0x2da   : > { %v1416_v51 = vsub.f32 %v1384_v57, %v5091_v27 }
 0x2db   : > { %v1431_v0 = vpack.c.bf16 %v1415_v44, %v1413_v43 }
 0x2dc   : > { %v1432_v28 = vpack.c.bf16 %v1416_v51, %v1414_v50 }
 0x2dd   : > { %3448 = vmatmul.mubr.bf16.gmra.mrb[12].mxu0 %v1431_v0 }
 0x2de   : > { %3480 = vmatmul.mubr.bf16.gmra.mrb[12].mxu1 %v1432_v28  ;;  %1885 = vmatprep.mubr.bf16.mxu0 %v5087_v55 }
 0x2e5   : > { %1886 = vmatmul.mubr.bf16.vlgmr.msra.gmra.mrb[48].mxu0 %v4757_v32 }
 0x2e6   : > { %1895 = vmatprep.mubr.bf16.mxu0 %v5087_v55  ;;  %3484 = vmatpush3.bf16.msra.mxu0 %v4684_v2  ;;  %v4779_v2 = vld [vmem:[#allocation6 + $0x58] sm:$0xff]  }
 0x2e7   : > { %3485 = vmatprep.subr.bf16.mxu0 %v4695_v6 }
 0x2ea   : > { %3486 = vmatpush3.bf16.msra.mxu0 %v4695_v6  ;;  %v4784_v6 = vld [vmem:[#allocation6 + $0x60] sm:$0xff]  }
 0x2eb   : > { %3487 = vmatprep.subr.bf16.mxu0 %v4701_v17 }
 0x2ed   : > { %1896 = vmatmul.mubr.bf16.gmra.mrb[52].mxu0 %v4763_v33 }
 0x2ee   : > { %1905 = vmatprep.mubr.bf16.mxu0 %v5087_v55  ;;  %3488 = vmatpush3.bf16.msra.mxu0 %v4701_v17  ;;  %v4788_v17 = vld [vmem:[#allocation6 + $0x68] sm:$0xff]  }
 0x2ef   : > { %3489 = vmatprep.subr.bf16.mxu0 %v4711_v12 }
 0x2f2   : > { %3490 = vmatpush3.bf16.msra.mxu0 %v4711_v12  ;;  %v4792_v12 = vld [vmem:[#allocation6 + $0x70] sm:$0xff]  }
 0x2f3   : > { %3491 = vmatprep.subr.bf16.mxu0 %v4717_v1 }
 0x2f5   : > { %1906 = vmatmul.mubr.bf16.gmra.mrb[56].mxu0 %v4771_v23 }
 0x2f6   : > { %1915 = vmatprep.mubr.bf16.mxu0 %v5087_v55  ;;  %3492 = vmatpush3.bf16.msra.mxu0 %v4717_v1  ;;  %v4796_v1 = vld [vmem:[#allocation6 + $0x78] sm:$0xff]  }
 0x2f7   : > { %3493 = vmatprep.subr.bf16.mxu0 %v4727_v8 }
 0x2fa   : > { %3494 = vmatpush3.bf16.msra.mxu0 %v4727_v8  ;;  %v3891_v8 = vld [vmem:[#allocation8 + $0xf0] sm:$0xff]  }
 0x2fb   : > { %3527 = vmatprep.subr.bf16.mxu1 %v3891_v8  ;;  %3495 = vmatprep.subr.bf16.mxu0 %v3891_v8 }
 0x2fc   : > { %3528 = vmatpush3.bf16.msra.mxu1 %v3891_v8 }
 0x2fd   : > { %1916 = vmatmul.mubr.bf16.gmra.mrb[60].mxu0 %v4779_v2  ;;  %3529 = vmatprep.subr.bf16.mxu1 %v3892_v53 }
 0x2fe   : > { %1925 = vmatprep.mubr.bf16.mxu0 %v5087_v55  ;;  %3496 = vmatpush3.bf16.msra.mxu0 %v3891_v8  ;;  %v5092_v8 = vld [vmem:[#allocation17_spill] sm:$0xff] }
 0x2ff   : > { %3497 = vmatprep.subr.bf16.mxu0 %v3892_v53 }
 0x300   : > { %3530 = vmatpush3.bf16.msra.mxu1 %v3892_v53 }
 0x302   : > { %3498 = vmatpush3.bf16.msra.mxu0 %v3892_v53 }
 0x303   : > { %3547 = vmatprep.subr.bf16.mxu0 %v4799_v13 }
 0x305   : > { %1926 = vmatmul.mubr.bf16.gmra.mrb[64].mxu0 %v4784_v6 }
 0x306   : > { %1935 = vmatprep.mubr.bf16.mxu0 %v5087_v55 }
 0x30d   : > { %1936 = vmatmul.mubr.bf16.gmra.mrb[68].mxu0 %v4788_v17 }
 0x30e   : > { %1945 = vmatprep.mubr.bf16.mxu0 %v5087_v55 }
 0x315   : > { %1946 = vmatmul.mubr.bf16.gmra.mrb[72].mxu0 %v4792_v12 }
 0x316   : > { %1955 = vmatprep.mubr.bf16.mxu0 %v5087_v55 }
 0x31d   : > { %1956 = vmatmul.mubr.bf16.gmra.mrb[76].mxu0 %v4796_v1 }
 0x3b8   : > { %v1887_v3 = vpop.f32.mrb[48].mxu0 }
 0x3b9   : > { %v1889_v45 = vpop.f32.mrb[49].mxu0 }
 0x3ba   : > { %v1891_v21 = vpop.f32.mrb[50].mxu0 }
 0x3bb   : > { %v1966_v54 = vpack.c.bf16 %v1891_v21, %v1887_v3  ;;  %v1893_v20 = vpop.f32.mrb[51].mxu0 }
 0x3bc   : > { %v1967_v9 = vpack.c.bf16 %v1893_v20, %v1889_v45  ;;  %v5093_v45 = vld [vmem:[#allocation18_spill] sm:$0xff]  ;;  %v5094_v20 = vld [vmem:[#allocation19_spill] sm:$0xff] }
 0x3bd   : > { %3499 = vmatprep.mubr.bf16.mxu0 %v1966_v54 }
 0x3be   : > { %3531 = vmatprep.mubr.bf16.mxu1 %v1967_v9  ;;  %2337 = vmatprep.subr.bf16.mxu1 %v1967_v9 }
 0x3c0   : > { %v1897_v56 = vpop.f32.mrb[52].mxu0 }
 0x3c1   : > { %v1899_v14 = vpop.f32.mrb[53].mxu0 }
 0x3c2   : > { %v1901_v15 = vpop.f32.mrb[54].mxu0 }
 0x3c3   : > { %v1968_v29 = vpack.c.bf16 %v1901_v15, %v1897_v56  ;;  %v1903_v30 = vpop.f32.mrb[55].mxu0  ;;  %v5095_v56 = vld [vmem:[#allocation20_spill] sm:$0xff] }
 0x3c4   : > { %v1969_v37 = vpack.c.bf16 %v1903_v30, %v1899_v14 }
 0x3c5   : > { %3500 = vmatmul.mubr.bf16.vlgmr.msra.gmra.mrb[0].mxu0 %v1968_v29 }
 0x3c6   : > { %3532 = vmatmul.mubr.bf16.vlgmr.msra.gmra.mrb[0].mxu1 %v1969_v37  ;;  %3548 = vmatpush3.bf16.msra.mxu0 %v4799_v13 }
 0x3c7   : > { %2338 = vmatpush1.bf16.msra.mxu1 %v1966_v54  ;;  %3549 = vmatprep.subr.bf16.mxu0 %v4802_v36 }
 0x3c8   : > { %2339 = vmatprep.subr.bf16.mxu1 %v1969_v37  ;;  %v1907_v35 = vpop.f32.mrb[56].mxu0 }
 0x3c9   : > { %v1909_v16 = vpop.f32.mrb[57].mxu0 }
 0x3ca   : > { %v1911_v52 = vpop.f32.mrb[58].mxu0  ;;  %3550 = vmatpush3.bf16.msra.mxu0 %v4802_v36 }
 0x3cb   : > { %v1970_v49 = vpack.c.bf16 %v1911_v52, %v1907_v35  ;;  %2340 = vmatpush1.bf16.msra.mxu1 %v1968_v29  ;;  %v1913_v31 = vpop.f32.mrb[59].mxu0  ;;  %3551 = vmatprep.subr.bf16.mxu0 %v4806_v62 }
 0x3cc   : > { %v1971_v10 = vpack.c.bf16 %v1913_v31, %v1909_v16  ;;  %v5096_v16 = vld [vmem:[#allocation21_spill] sm:$0xff] }
 0x3cd   : > { %3503 = vmatprep.mubr.bf16.mxu0 %v1970_v49 }
 0x3ce   : > { %3535 = vmatprep.mubr.bf16.mxu1 %v1971_v10  ;;  %2341 = vmatprep.subr.bf16.mxu1 %v1971_v10  ;;  %v5097_v10 = vld [vmem:[#allocation22_spill] sm:$0xff] }
 0x3cf   : > { %2342 = vmatpush1.bf16.msra.mxu1 %v1970_v49  ;;  %3552 = vmatpush3.bf16.msra.mxu0 %v4806_v62 }
 0x3d0   : > { %v1917_v48 = vpop.f32.mrb[60].mxu0  ;;  %3553 = vmatprep.subr.bf16.mxu0 %v4810_v25 }
 0x3d1   : > { %v1919_v34 = vpop.f32.mrb[61].mxu0 }
 0x3d2   : > { %v1921_v60 = vpop.f32.mrb[62].mxu0 }
 0x3d3   : > { %v1972_v41 = vpack.c.bf16 %v1921_v60, %v1917_v48  ;;  %v1923_v61 = vpop.f32.mrb[63].mxu0  ;;  %3554 = vmatpush3.bf16.msra.mxu0 %v4810_v25 }
 0x3d4   : > { %v1973_v42 = vpack.c.bf16 %v1923_v61, %v1919_v34  ;;  %v5098_v34 = vld [vmem:[#allocation23_spill] sm:$0xff] }
 0x3d5   : > { %3504 = vmatmul.mubr.bf16.gmra.mrb[4].mxu0 %v1972_v41 }
 0x3d6   : > { %3536 = vmatmul.mubr.bf16.gmra.mrb[4].mxu1 %v1973_v42  ;;  %2343 = vmatprep.subr.bf16.mxu1 %v1973_v42 }
 0x3d7   : > { %2344 = vmatpush1.bf16.msra.mxu1 %v1972_v41  ;;  %v5099_v41 = vld [vmem:[#allocation24_spill] sm:$0xff] }
 0x3d8   : > { %v1927_v46 = vpop.f32.mrb[64].mxu0 }
 0x3d9   : > { %v1929_v47 = vpop.f32.mrb[65].mxu0 }
 0x3da   : > { %v1931_v59 = vpop.f32.mrb[66].mxu0 }
 0x3db   : > { %v1974_v18 = vpack.c.bf16 %v1931_v59, %v1927_v46  ;;  %v1933_v63 = vpop.f32.mrb[67].mxu0 }
 0x3dc   : > { %v1975_v19 = vpack.c.bf16 %v1933_v63, %v1929_v47 }
 0x3dd   : > { %3507 = vmatprep.mubr.bf16.mxu0 %v1974_v18 }
 0x3de   : > { %3539 = vmatprep.mubr.bf16.mxu1 %v1975_v19  ;;  %2345 = vmatprep.subr.bf16.mxu1 %v1975_v19 }
 0x3df   : > { %2346 = vmatpush1.bf16.msra.mxu1 %v1974_v18 }
 0x3e0   : > { %v1937_v22 = vpop.f32.mrb[68].mxu0 }
 0x3e1   : > { %v1939_v24 = vpop.f32.mrb[69].mxu0 }
 0x3e2   : > { %v1941_v39 = vpop.f32.mrb[70].mxu0 }
 0x3e3   : > { %v1976_v11 = vpack.c.bf16 %v1941_v39, %v1937_v22  ;;  %v1943_v26 = vpop.f32.mrb[71].mxu0  ;;  %v5100_v22 = vld [vmem:[#allocation25_spill] sm:$0xff] }
 0x3e4   : > { %v1977_v40 = vpack.c.bf16 %v1943_v26, %v1939_v24  ;;  %v5101_v26 = vld [vmem:[#allocation26_spill] sm:$0xff] }
 0x3e5   : > { %3508 = vmatmul.mubr.bf16.gmra.mrb[8].mxu0 %v1976_v11 }
 0x3e6   : > { %3540 = vmatmul.mubr.bf16.gmra.mrb[8].mxu1 %v1977_v40  ;;  %2347 = vmatprep.subr.bf16.mxu1 %v1977_v40 }
 0x3e7   : > { %2348 = vmatpush1.bf16.msra.mxu1 %v1976_v11 }
 0x3e8   : > { %v1947_v4 = vpop.f32.mrb[72].mxu0 }
 0x3e9   : > { %v1949_v57 = vpop.f32.mrb[73].mxu0 }
 0x3ea   : > { %v1951_v38 = vpop.f32.mrb[74].mxu0 }
 0x3eb   : > { %v1978_v43 = vpack.c.bf16 %v1951_v38, %v1947_v4  ;;  %v1953_v5 = vpop.f32.mrb[75].mxu0 }
 0x3ec   : > { %v1979_v44 = vpack.c.bf16 %v1953_v5, %v1949_v57  ;;  %v5102_v57 = vld [vmem:[#allocation27_spill] sm:$0xff] }
 0x3ed   : > { %3511 = vmatprep.mubr.bf16.mxu0 %v1978_v43 }
 0x3ee   : > { %3543 = vmatprep.mubr.bf16.mxu1 %v1979_v44  ;;  %2349 = vmatprep.subr.bf16.mxu1 %v1979_v44 }
 0x3ef   : > { %2350 = vmatpush1.bf16.msra.mxu1 %v1978_v43  ;;  %v5103_v43 = vld [vmem:[#allocation28_spill] sm:$0xff] }
 0x3f0   : > { %v1957_v7 = vpop.f32.mrb[76].mxu0 }
 0x3f1   : > { %v1959_v50 = vpop.f32.mrb[77].mxu0 }
 0x3f2   : > { %v1961_v27 = vpop.f32.mrb[78].mxu0 }
 0x3f3   : > { %v1980_v51 = vpack.c.bf16 %v1961_v27, %v1957_v7  ;;  %v1963_v0 = vpop.f32.mrb[79].mxu0 }
 0x3f4   : > { %v1981_v28 = vpack.c.bf16 %v1963_v0, %v1959_v50 }
 0x3f5   : > { %3512 = vmatmul.mubr.bf16.gmra.mrb[12].mxu0 %v1980_v51 }
 0x3f6   : > { %3544 = vmatmul.mubr.bf16.gmra.mrb[12].mxu1 %v1981_v28  ;;  %2351 = vmatprep.subr.bf16.mxu1 %v1981_v28 }
 0x3f7   : > { %2352 = vmatpush1.bf16.msra.mxu1 %v1980_v51  ;;  %2369 = vmatprep.mubr.bf16.mxu1 %v5087_v55 }
 0x3f8   : > { %3579 = vmatprep.subr.bf16.mxu1 %v4799_v13 }
 0x3fe   : > { %2370 = vmatmul.mubr.bf16.vlgmr.msra.gmra.mrb[48].mxu1 %v4757_v32  ;;  %v3897_v32 = vld [vmem:[#allocation8 + $0x120] sm:$0xff]  }
 0x3ff   : > { %2379 = vmatprep.mubr.bf16.mxu1 %v5087_v55  ;;  %3580 = vmatpush3.bf16.msra.mxu1 %v4799_v13 }
 0x400   : > { %3581 = vmatprep.subr.bf16.mxu1 %v4802_v36  ;;  %3555 = vmatprep.subr.bf16.mxu0 %v3897_v32 }
 0x401   : > { %3556 = vmatpush3.bf16.msra.mxu0 %v3897_v32 }
 0x403   : > { %3582 = vmatpush3.bf16.msra.mxu1 %v4802_v36 }
 0x404   : > { %3583 = vmatprep.subr.bf16.mxu1 %v4806_v62 }
 0x406   : > { %2380 = vmatmul.mubr.bf16.gmra.mrb[52].mxu1 %v4763_v33  ;;  %v3898_v33 = vld [vmem:[#allocation8 + $0x128] sm:$0xff]  }
 0x407   : > { %2389 = vmatprep.mubr.bf16.mxu1 %v5087_v55  ;;  %3584 = vmatpush3.bf16.msra.mxu1 %v4806_v62 }
 0x408   : > { %3585 = vmatprep.subr.bf16.mxu1 %v4810_v25  ;;  %3557 = vmatprep.subr.bf16.mxu0 %v3898_v33 }
 0x409   : > { %3558 = vmatpush3.bf16.msra.mxu0 %v3898_v33 }
 0x40b   : > { %3586 = vmatpush3.bf16.msra.mxu1 %v4810_v25 }
 0x40c   : > { %3587 = vmatprep.subr.bf16.mxu1 %v3897_v32 }
 0x40e   : > { %2390 = vmatmul.mubr.bf16.gmra.mrb[56].mxu1 %v4771_v23  ;;  %v3899_v23 = vld [vmem:[#allocation8 + $0x130] sm:$0xff]  }
 0x40f   : > { %2399 = vmatprep.mubr.bf16.mxu1 %v5087_v55  ;;  %3588 = vmatpush3.bf16.msra.mxu1 %v3897_v32  ;;  %v5104_v32 = vld [vmem:[#allocation29_spill] sm:$0xff] }
 0x410   : > { %3589 = vmatprep.subr.bf16.mxu1 %v3898_v33  ;;  %3559 = vmatprep.subr.bf16.mxu0 %v3899_v23 }
 0x411   : > { %3560 = vmatpush3.bf16.msra.mxu0 %v3899_v23 }
 0x413   : > { %3590 = vmatpush3.bf16.msra.mxu1 %v3898_v33 }
 0x414   : > { %3591 = vmatprep.subr.bf16.mxu1 %v3899_v23 }
 0x416   : > { %2400 = vmatmul.mubr.bf16.gmra.mrb[60].mxu1 %v4779_v2  ;;  %v3900_v2 = vld [vmem:[#allocation8 + $0x138] sm:$0xff]  }
 0x417   : > { %2409 = vmatprep.mubr.bf16.mxu1 %v5087_v55  ;;  %3592 = vmatpush3.bf16.msra.mxu1 %v3899_v23 }
 0x418   : > { %3561 = vmatprep.subr.bf16.mxu0 %v3900_v2  ;;  %3593 = vmatprep.subr.bf16.mxu1 %v3900_v2 }
 0x419   : > { %3562 = vmatpush3.bf16.msra.mxu0 %v3900_v2 }
 0x41b   : > { %3594 = vmatpush3.bf16.msra.mxu1 %v3900_v2 }
 0x41e   : > { %2410 = vmatmul.mubr.bf16.gmra.mrb[64].mxu1 %v4784_v6 }
 0x41f   : > { %2419 = vmatprep.mubr.bf16.mxu1 %v5087_v55 }
 0x426   : > { %2420 = vmatmul.mubr.bf16.gmra.mrb[68].mxu1 %v4788_v17 }
 0x427   : > { %2429 = vmatprep.mubr.bf16.mxu1 %v5087_v55 }
 0x42e   : > { %2430 = vmatmul.mubr.bf16.gmra.mrb[72].mxu1 %v4792_v12 }
 0x42f   : > { %2439 = vmatprep.mubr.bf16.mxu1 %v5087_v55 }
 0x436   : > { %2440 = vmatmul.mubr.bf16.gmra.mrb[76].mxu1 %v4796_v1 }
 0x4d1   : > { %v2371_v55 = vpop.f32.mrb[48].mxu1 }
 0x4d2   : > { %v2450_v6 = vmul.f32 2.0, %v2371_v55  ;;  %v2373_v17 = vpop.f32.mrb[49].mxu1  ;;  %v5105_v55 = vld [vmem:[#allocation30_spill] sm:$0xff] }
 0x4d3   : > { %v2451_v12 = vmul.f32 2.0, %v2373_v17  ;;  %v2375_v1 = vpop.f32.mrb[50].mxu1 }
 0x4d4   : > { %v2482_v53 = vsub.f32 %v2450_v6, %v5092_v8  ;;  %v2452_v13 = vmul.f32 2.0, %v2375_v1  ;;  %v2377_v3 = vpop.f32.mrb[51].mxu1  ;;  %v5107_v8 = vld [vmem:[#allocation32_spill] sm:$0xff] }
 0x4d5   : > { %v2483_v21 = vsub.f32 %v2451_v12, %v5093_v45  ;;  %v2453_v54 = vmul.f32 2.0, %v2377_v3  ;;  %v5106_v12 = vld [vmem:[#allocation31_spill] sm:$0xff] }
 0x4d6   : > { %v2484_v9 = vsub.f32 %v2452_v13, %v5094_v20 }
 0x4d7   : > { %v2485_v14 = vsub.f32 %v2453_v54, %v5095_v56  ;;  %v5108_v56 = vld [vmem:[#allocation33_spill] sm:$0xff] }
 0x4d8   : > { %v2514_v15 = vpack.c.bf16 %v2484_v9, %v2482_v53 }
 0x4d9   : > { %v2381_v29 = vpop.f32.mrb[52].mxu1  ;;  %v2515_v30 = vpack.c.bf16 %v2485_v14, %v2483_v21 }
 0x4da   : > { %v2454_v36 = vmul.f32 2.0, %v2381_v29  ;;  %v2383_v37 = vpop.f32.mrb[53].mxu1  ;;  %3563 = vmatprep.mubr.bf16.mxu0 %v2514_v15 }
 0x4db   : > { %v2455_v62 = vmul.f32 2.0, %v2383_v37  ;;  %v2385_v35 = vpop.f32.mrb[54].mxu1  ;;  %3595 = vmatprep.mubr.bf16.mxu1 %v2515_v30  ;;  %v5109_v30 = vld [vmem:[#allocation34_spill] sm:$0xff] }
 0x4dc   : > { %v2486_v52 = vsub.f32 %v2454_v36, %v5096_v16  ;;  %v2456_v49 = vmul.f32 2.0, %v2385_v35  ;;  %v2387_v31 = vpop.f32.mrb[55].mxu1  ;;  %v5111_v16 = vld [vmem:[#allocation36_spill] sm:$0xff] }
 0x4dd   : > { %v2487_v25 = vsub.f32 %v2455_v62, %v5097_v10  ;;  %v2457_v48 = vmul.f32 2.0, %v2387_v31  ;;  %v5110_v62 = vld [vmem:[#allocation35_spill] sm:$0xff] }
 0x4de   : > { %v2488_v60 = vsub.f32 %v2456_v49, %v5098_v34 }
 0x4df   : > { %v2489_v61 = vsub.f32 %v2457_v48, %v5099_v41  ;;  %v5112_v41 = vld [vmem:[#allocation37_spill] sm:$0xff] }
 0x4e0   : > { %v2516_v42 = vpack.c.bf16 %v2488_v60, %v2486_v52 }
 0x4e1   : > { %v2517_v46 = vpack.c.bf16 %v2489_v61, %v2487_v25  ;;  %v2391_v47 = vpop.f32.mrb[56].mxu1 }
 0x4e2   : > { %v2458_v59 = vmul.f32 2.0, %v2391_v47  ;;  %v2393_v18 = vpop.f32.mrb[57].mxu1  ;;  %3564 = vmatmul.mubr.bf16.vlgmr.msra.gmra.mrb[0].mxu0 %v2516_v42  ;;  %v5113_v47 = vld [vmem:[#allocation38_spill] sm:$0xff] }
 0x4e3   : > { %v2459_v63 = vmul.f32 2.0, %v2393_v18  ;;  %v2395_v19 = vpop.f32.mrb[58].mxu1  ;;  %3596 = vmatmul.mubr.bf16.vlgmr.msra.gmra.mrb[0].mxu1 %v2517_v46 }
 0x4e4   : > { %v2490_v24 = vsub.f32 %v2458_v59, %v5100_v22  ;;  %v2460_v39 = vmul.f32 2.0, %v2395_v19  ;;  %v2397_v11 = vpop.f32.mrb[59].mxu1  ;;  %v5115_v22 = vld [vmem:[#allocation40_spill] sm:$0xff] }
 0x4e5   : > { %v2491_v40 = vsub.f32 %v2459_v63, %v5101_v26  ;;  %v2461_v4 = vmul.f32 2.0, %v2397_v11  ;;  %v5114_v63 = vld [vmem:[#allocation39_spill] sm:$0xff] }
 0x4e6   : > { %v2492_v38 = vsub.f32 %v2460_v39, %v5102_v57 }
 0x4e7   : > { %v2493_v5 = vsub.f32 %v2461_v4, %v5103_v43  ;;  %v5116_v43 = vld [vmem:[#allocation41_spill] sm:$0xff] }
 0x4e8   : > { %v2518_v44 = vpack.c.bf16 %v2492_v38, %v2490_v24 }
 0x4e9   : > { %v2401_v7 = vpop.f32.mrb[60].mxu1  ;;  %v2519_v50 = vpack.c.bf16 %v2493_v5, %v2491_v40 }
 0x4ea   : > { %v2462_v27 = vmul.f32 2.0, %v2401_v7  ;;  %v2403_v51 = vpop.f32.mrb[61].mxu1  ;;  %3567 = vmatprep.mubr.bf16.mxu0 %v2518_v44 }
 0x4eb   : > { %v2463_v0 = vmul.f32 2.0, %v2403_v51  ;;  %v2405_v28 = vpop.f32.mrb[62].mxu1  ;;  %3599 = vmatprep.mubr.bf16.mxu1 %v2519_v50  ;;  %v5117_v50 = vld [vmem:[#allocation42_spill] sm:$0xff] }
 0x4ec   : > { %v2494_v33 = vsub.f32 %v2462_v27, %v5104_v32  ;;  %v2464_v23 = vmul.f32 2.0, %v2405_v28  ;;  %v2407_v2 = vpop.f32.mrb[63].mxu1  ;;  %v5119_v32 = vld [vmem:[#allocation44_spill] sm:$0xff] }
 0x4ed   : > { %v2495_v6 = vsub.f32 %v2463_v0, %v5105_v55  ;;  %v2465_v17 = vmul.f32 2.0, %v2407_v2  ;;  %v5118_v0 = vld [vmem:[#allocation43_spill] sm:$0xff] }
 0x4ee   : > { %v2496_v1 = vsub.f32 %v2464_v23, %v5106_v12 }
 0x4ef   : > { %v2497_v53 = vsub.f32 %v2465_v17, %v5107_v8 }
 0x4f0   : > { %v2520_v13 = vpack.c.bf16 %v2496_v1, %v2494_v33 }
 0x4f1   : > { %v2411_v3 = vpop.f32.mrb[64].mxu1  ;;  %v2521_v45 = vpack.c.bf16 %v2497_v53, %v2495_v6 }
 0x4f2   : > { %v2466_v21 = vmul.f32 2.0, %v2411_v3  ;;  %v2413_v54 = vpop.f32.mrb[65].mxu1  ;;  %3568 = vmatmul.mubr.bf16.gmra.mrb[4].mxu0 %v2520_v13  ;;  %v5120_v3 = vld [vmem:[#allocation45_spill] sm:$0xff] }
 0x4f3   : > { %v2467_v20 = vmul.f32 2.0, %v2413_v54  ;;  %v2415_v9 = vpop.f32.mrb[66].mxu1  ;;  %3600 = vmatmul.mubr.bf16.gmra.mrb[4].mxu1 %v2521_v45  ;;  %v5121_v54 = vld [vmem:[#allocation46_spill] sm:$0xff] }
 0x4f4   : > { %v2498_v14 = vsub.f32 %v2466_v21, %v5108_v56  ;;  %v2468_v15 = vmul.f32 2.0, %v2415_v9  ;;  %v2417_v29 = vpop.f32.mrb[67].mxu1  ;;  %v5122_v9 = vld [vmem:[#allocation47_spill] sm:$0xff] }
 0x4f5   : > { %v2499_v36 = vsub.f32 %v2467_v20, %v5109_v30  ;;  %v2469_v37 = vmul.f32 2.0, %v2417_v29  ;;  %v248_v29 = vlaneseq }
 0x4f6   : > { %v2500_v35 = vsub.f32 %v2468_v15, %v5110_v62 }
 0x4f7   : > { %v2501_v52 = vsub.f32 %v2469_v37, %v5111_v16  ;;  %v249_v30 = vshrl.u32 %v248_v29, 7 }
 0x4f8   : > { %v2522_v49 = vpack.c.bf16 %v2500_v35, %v2498_v14 }
 0x4f9   : > { %v2421_v31 = vpop.f32.mrb[68].mxu1  ;;  %v2523_v10 = vpack.c.bf16 %v2501_v52, %v2499_v36  ;;  %v250_v36 = vsub.s32 0, %v249_v30  ;;  %v254_v37 = vsub.s32 1, %v249_v30 }
 0x4fa   : > { %v2470_v25 = vmul.f32 2.0, %v2421_v31  ;;  %v2423_v48 = vpop.f32.mrb[69].mxu1  ;;  %3571 = vmatprep.mubr.bf16.mxu0 %v2522_v49 }
 0x4fb   : > { %v2471_v34 = vmul.f32 2.0, %v2423_v48  ;;  %v2425_v60 = vpop.f32.mrb[70].mxu1  ;;  %3603 = vmatprep.mubr.bf16.mxu1 %v2523_v10 }
 0x4fc   : > { %v2502_v61 = vsub.f32 %v2470_v25, %v5112_v41  ;;  %v2472_v42 = vmul.f32 2.0, %v2425_v60  ;;  %v2427_v46 = vpop.f32.mrb[71].mxu1 }
 0x4fd   : > { %v2503_v59 = vsub.f32 %v2471_v34, %v5113_v47  ;;  %v2473_v18 = vmul.f32 2.0, %v2427_v46 }
 0x4fe   : > { %v2504_v19 = vsub.f32 %v2472_v42, %v5114_v63 }
 0x4ff   : > { %v2505_v24 = vsub.f32 %v2473_v18, %v5115_v22 }
 0x500   : > { %v2524_v39 = vpack.c.bf16 %v2504_v19, %v2502_v61 }
 0x501   : > { %v2431_v11 = vpop.f32.mrb[72].mxu1  ;;  %v2525_v26 = vpack.c.bf16 %v2505_v24, %v2503_v59 }
 0x502   : > { %v2474_v40 = vmul.f32 2.0, %v2431_v11  ;;  %v2433_v4 = vpop.f32.mrb[73].mxu1  ;;  %3572 = vmatmul.mubr.bf16.gmra.mrb[8].mxu0 %v2524_v39 }
 0x503   : > { %v2475_v57 = vmul.f32 2.0, %v2433_v4  ;;  %v2435_v38 = vpop.f32.mrb[74].mxu1  ;;  %3604 = vmatmul.mubr.bf16.gmra.mrb[8].mxu1 %v2525_v26 }
 0x504   : > { %v2506_v5 = vsub.f32 %v2474_v40, %v5116_v43  ;;  %v2476_v44 = vmul.f32 2.0, %v2435_v38  ;;  %v2437_v7 = vpop.f32.mrb[75].mxu1 }
 0x505   : > { %v2507_v27 = vsub.f32 %v2475_v57, %v5117_v50  ;;  %v2477_v51 = vmul.f32 2.0, %v2437_v7 }
 0x506   : > { %v2508_v28 = vsub.f32 %v2476_v44, %v5118_v0 }
 0x507   : > { %v2509_v33 = vsub.f32 %v2477_v51, %v5119_v32 }
 0x508   : > { %v2526_v23 = vpack.c.bf16 %v2508_v28, %v2506_v5 }
 0x509   : > { %v2441_v2 = vpop.f32.mrb[76].mxu1  ;;  %v2527_v55 = vpack.c.bf16 %v2509_v33, %v2507_v27 }
 0x50a   : > { %v2478_v6 = vmul.f32 2.0, %v2441_v2  ;;  %v2443_v17 = vpop.f32.mrb[77].mxu1  ;;  %3575 = vmatprep.mubr.bf16.mxu0 %v2526_v23 }
 0x50b   : > { %v2479_v12 = vmul.f32 2.0, %v2443_v17  ;;  %v2445_v1 = vpop.f32.mrb[78].mxu1  ;;  %3607 = vmatprep.mubr.bf16.mxu1 %v2527_v55 }
 0x50c   : > { %v2510_v8 = vsub.f32 %v2478_v6, %v4632_v58  ;;  %v2480_v53 = vmul.f32 2.0, %v2445_v1  ;;  %v2447_v13 = vpop.f32.mrb[79].mxu1  ;;  %v246_v58 = vld [vmem:[%s4999_s3] sm:$0x3] }
 0x50d   : > { %v2511_v45 = vsub.f32 %v2479_v12, %v5120_v3  ;;  %v2481_v21 = vmul.f32 2.0, %v2447_v13  ;;  %v4874_v62 = vrot.slane %v246_v58, %v250_v36  ;;  %v4876_v35 = vrot.slane %v246_v58, %v254_v37 }
 0x50e   : > { %v2512_v20 = vsub.f32 %v2480_v53, %v5121_v54 }
 0x50f   : > { %v2513_v56 = vsub.f32 %v2481_v21, %v5122_v9 }
 0x510   : > { %v2528_v14 = vpack.c.bf16 %v2512_v20, %v2510_v8 }
 0x511   : > { %v2529_v15 = vpack.c.bf16 %v2513_v56, %v2511_v45 }
 0x512   : > { %3576 = vmatmul.mubr.bf16.gmra.mrb[12].mxu0 %v2528_v14 }
 0x513   : > { %3608 = vmatmul.mubr.bf16.gmra.mrb[12].mxu1 %v2529_v15 }
 0x5b5   : > { %v3565_v16 = vpop.f32.mrb[0].mxu0 }
 0x5b6   : > { %v3611_v52 = vadd.f32 %v3565_v16, %v4874_v62  ;;  %v2645_v49 = vpop.f32.mrb[1].mxu0  ;;  %v3597_v31 = vpop.f32.mrb[0].mxu1 }
 0x5b7   : > { %v3612_v10 = vadd.f32 %v2645_v49, %v4874_v62  ;;  %v3627_v25 = vadd.f32 %v3597_v31, %v4876_v35  ;;  %v3566_v48 = vpop.f32.mrb[2].mxu0  ;;  %v2790_v34 = vpop.f32.mrb[1].mxu1 }
 0x5b8   : > { %2921 = vst [vmem:[%s4883_s27 + $0x20] sm:$0xff] %v3611_v52  ;;  %v3613_v60 = vadd.f32 %v3566_v48, %v4874_v62  ;;  %v3628_v41 = vadd.f32 %v2790_v34, %v4876_v35  ;;  %v2648_v61 = vpop.f32.mrb[3].mxu0  ;;  %v3598_v42 = vpop.f32.mrb[2].mxu1 }
 0x5b9   : > { %2917 = vst [vmem:[%s4883_s27] sm:$0xff] %v3612_v10  ;;  %2922 = vst [vmem:[%s4883_s27 + $0x28] sm:$0xff] %v3627_v25  ;;  %v3614_v46 = vadd.f32 %v2648_v61, %v4874_v62  ;;  %v3629_v47 = vadd.f32 %v3598_v42, %v4876_v35  ;;  %v2793_v59 = vpop.f32.mrb[3].mxu1 }
 0x5ba   : > { %2923 = vst [vmem:[%s4883_s27 + $0x30] sm:$0xff] %v3613_v60  ;;  %2918 = vst [vmem:[%s4883_s27 + $0x8] sm:$0xff] %v3628_v41  ;;  %v3630_v18 = vadd.f32 %v2793_v59, %v4876_v35 }
 0x5bb   : > { %2919 = vst [vmem:[%s4883_s27 + $0x10] sm:$0xff] %v3614_v46  ;;  %2924 = vst [vmem:[%s4883_s27 + $0x38] sm:$0xff] %v3629_v47 }
 0x5bc   : > { %2920 = vst [vmem:[%s4883_s27 + $0x18] sm:$0xff] %v3630_v18 }
 0x5c5   : > { %v3569_v63 = vpop.f32.mrb[4].mxu0 }
 0x5c6   : > { %v3615_v19 = vadd.f32 %v3569_v63, %v4874_v62  ;;  %v2661_v22 = vpop.f32.mrb[5].mxu0  ;;  %v3601_v24 = vpop.f32.mrb[4].mxu1 }
 0x5c7   : > { %v3616_v39 = vadd.f32 %v2661_v22, %v4874_v62  ;;  %v3631_v11 = vadd.f32 %v3601_v24, %v4876_v35  ;;  %v3570_v26 = vpop.f32.mrb[6].mxu0  ;;  %v2806_v40 = vpop.f32.mrb[5].mxu1 }
 0x5c8   : > { %2929 = vst [vmem:[%s4883_s27 + $0x60] sm:$0xff] %v3615_v19  ;;  %v3617_v4 = vadd.f32 %v3570_v26, %v4874_v62  ;;  %v3632_v57 = vadd.f32 %v2806_v40, %v4876_v35  ;;  %v2664_v38 = vpop.f32.mrb[7].mxu0  ;;  %v3602_v43 = vpop.f32.mrb[6].mxu1 }
 0x5c9   : > { %2925 = vst [vmem:[%s4883_s27 + $0x40] sm:$0xff] %v3616_v39  ;;  %2930 = vst [vmem:[%s4883_s27 + $0x68] sm:$0xff] %v3631_v11  ;;  %v3618_v5 = vadd.f32 %v2664_v38, %v4874_v62  ;;  %v3633_v44 = vadd.f32 %v3602_v43, %v4876_v35  ;;  %v2809_v7 = vpop.f32.mrb[7].mxu1 }
 0x5ca   : > { %2931 = vst [vmem:[%s4883_s27 + $0x70] sm:$0xff] %v3617_v4  ;;  %2926 = vst [vmem:[%s4883_s27 + $0x48] sm:$0xff] %v3632_v57  ;;  %v3634_v50 = vadd.f32 %v2809_v7, %v4876_v35 }
 0x5cb   : > { %2927 = vst [vmem:[%s4883_s27 + $0x50] sm:$0xff] %v3618_v5  ;;  %2932 = vst [vmem:[%s4883_s27 + $0x78] sm:$0xff] %v3633_v44 }
 0x5cc   : > { %2928 = vst [vmem:[%s4883_s27 + $0x58] sm:$0xff] %v3634_v50 }
 0x5d5   : > { %v3573_v27 = vpop.f32.mrb[8].mxu0 }
 0x5d6   : > { %v3619_v51 = vadd.f32 %v3573_v27, %v4874_v62  ;;  %v2677_v0 = vpop.f32.mrb[9].mxu0  ;;  %v3605_v28 = vpop.f32.mrb[8].mxu1 }
 0x5d7   : > { %v3620_v32 = vadd.f32 %v2677_v0, %v4874_v62  ;;  %v3635_v33 = vadd.f32 %v3605_v28, %v4876_v35  ;;  %v3574_v23 = vpop.f32.mrb[10].mxu0  ;;  %v2822_v2 = vpop.f32.mrb[9].mxu1 }
 0x5d8   : > { %2937 = vst [vmem:[%s4883_s27 + $0xa0] sm:$0xff] %v3619_v51  ;;  %v3621_v55 = vadd.f32 %v3574_v23, %v4874_v62  ;;  %v3636_v6 = vadd.f32 %v2822_v2, %v4876_v35  ;;  %v2680_v17 = vpop.f32.mrb[11].mxu0  ;;  %v3606_v12 = vpop.f32.mrb[10].mxu1 }
 0x5d9   : > { %2933 = vst [vmem:[%s4883_s27 + $0x80] sm:$0xff] %v3620_v32  ;;  %2938 = vst [vmem:[%s4883_s27 + $0xa8] sm:$0xff] %v3635_v33  ;;  %v3622_v1 = vadd.f32 %v2680_v17, %v4874_v62  ;;  %v3637_v8 = vadd.f32 %v3606_v12, %v4876_v35  ;;  %v2825_v53 = vpop.f32.mrb[11].mxu1 }
 0x5da   : > { %2939 = vst [vmem:[%s4883_s27 + $0xb0] sm:$0xff] %v3621_v55  ;;  %2934 = vst [vmem:[%s4883_s27 + $0x88] sm:$0xff] %v3636_v6  ;;  %v3638_v13 = vadd.f32 %v2825_v53, %v4876_v35 }
 0x5db   : > { %2935 = vst [vmem:[%s4883_s27 + $0x90] sm:$0xff] %v3622_v1  ;;  %2940 = vst [vmem:[%s4883_s27 + $0xb8] sm:$0xff] %v3637_v8 }
 0x5dc   : > { %2936 = vst [vmem:[%s4883_s27 + $0x98] sm:$0xff] %v3638_v13 }
 0x5e5   : > { %v3577_v3 = vpop.f32.mrb[12].mxu0 }
 0x5e6   : > { %v3623_v45 = vadd.f32 %v3577_v3, %v4874_v62  ;;  %v2693_v21 = vpop.f32.mrb[13].mxu0  ;;  %v3609_v54 = vpop.f32.mrb[12].mxu1 }
 0x5e7   : > { %v3624_v20 = vadd.f32 %v2693_v21, %v4874_v62  ;;  %v3639_v9 = vadd.f32 %v3609_v54, %v4876_v35  ;;  %v3578_v56 = vpop.f32.mrb[14].mxu0  ;;  %v2838_v14 = vpop.f32.mrb[13].mxu1 }
 0x5e8   : > { %2945 = vst [vmem:[%s4883_s27 + $0xe0] sm:$0xff] %v3623_v45  ;;  %v3625_v15 = vadd.f32 %v3578_v56, %v4874_v62  ;;  %v3640_v29 = vadd.f32 %v2838_v14, %v4876_v35  ;;  %v2696_v30 = vpop.f32.mrb[15].mxu0  ;;  %v3610_v36 = vpop.f32.mrb[14].mxu1 }
 0x5e9   : > { %2941 = vst [vmem:[%s4883_s27 + $0xc0] sm:$0xff] %v3624_v20  ;;  %2946 = vst [vmem:[%s4883_s27 + $0xe8] sm:$0xff] %v3639_v9  ;;  %v3626_v58 = vadd.f32 %v2696_v30, %v4874_v62  ;;  %v3641_v37 = vadd.f32 %v3610_v36, %v4876_v35  ;;  %v2841_v16 = vpop.f32.mrb[15].mxu1 }
 0x5ea   : > { %2947 = vst [vmem:[%s4883_s27 + $0xf0] sm:$0xff] %v3625_v15  ;;  %2942 = vst [vmem:[%s4883_s27 + $0xc8] sm:$0xff] %v3640_v29  ;;  %v3642_v52 = vadd.f32 %v2841_v16, %v4876_v35 }
 0x5eb   : > { %2943 = vst [vmem:[%s4883_s27 + $0xd0] sm:$0xff] %v3626_v58  ;;  %2948 = vst [vmem:[%s4883_s27 + $0xf8] sm:$0xff] %v3641_v37 }
 0x5ec   : > { %2944 = vst [vmem:[%s4883_s27 + $0xd8] sm:$0xff] %v3642_v52 }
 0x5ed   : > { %4000 = shalt.err (!%p3997_p7)
}
 0x5ee   : > { %s4001_s25 = scalar_lea.hbm %s4945_s24, 4096  ;;  %s4005_s10 = scalar_lea.hbm %s5000_s4, 16384 }
 0x5ef   : > { %p4002_p9 = scmp.ne.s32.totalorder %s4945_s24, %s4001_s25  ;;  %p4006_p5 = scmp.lt.u32.totalorder %s4945_s24, %s5000_s4 }
 0x5f0   : > { %p4007_p10 = scmp.lt.u32.totalorder %s4005_s10, %s4001_s25  ;;  %p4009_p1 = scmp.lt.u32.totalorder %s4001_s25, %s4945_s24 }
 0x5f1   : > { %p4003_p12 = pnand %p4002_p9, %p4207_p4 }
 0x5f2   : > { %p4008_p11 = por %p4007_p10, %p4006_p5 }
 0x5f3   : > { %p4004_p0 = pneg %p4003_p12 }
 0x5f4   : > { %p4010_p2 = por %p4009_p1, %p4008_p11 }
 0x5f6   : > { %p4011_p6 = pnand %p4010_p2, %p4004_p0 }
 0x5f8   : > { %4014 = shalt.err (!%p4011_p6)
}
 0x5f9   : > { %s4068_s27 = smov 256   ;;  %s4069_s30 = smov 16  }
 0x5fa   : > { %3781 = dma.vmem_to_hbm [thread:$0]  (%p4207_p4), %s4947_s5, 4096, %s4945_s24, %s2950_s20, %s4068_s27, %s4068_s27, %s4069_s30  }
 0x5fb PF: > { %p3803_p8 = scmp.ge.s32.totalorder %s4057_s18, 2  ;;  %s2978_s19 = sand.u32 1, %s4045_s15  }
 0x5fc   : > { %p5123_p13 = scmp.ne.s32.totalorder %s5042_s22, 0  ;;  %s2979_s6 = scalar_lea.sflag [#allocation5], %s2978_s19 }
 0x5fe   : > { %p3795_p3 = pnand %p3803_p8, %p5123_p13 }
 0x600   : > { %4040 = dma.done.wait (!%p3795_p3), %s2979_s6, 4096  }
 0x601   : > { %4042 = vsyncadd (!%p3795_p3), %s2979_s6, 4294963200  ;;  %p18_p7 = scmp.ge.s32.totalorder %s4197_s9, 6   ;;  %s5124_s15 = smov %s4049_s16 }
 0x602   : > { %s5125_s16 = smov %s4053_s17  ;;  %s5126_s17 = smov %s4213_s14 }
 0x603   : > { %s5127_s18 = smov %s4197_s9  ;;  %20 = sbr.rel (!%p18_p7) target bundleno = 6 (0x6), region = 94 }
 0x60a   :  { %2984 = vsyncpa [#allocation4], 1 }
 0x60b   :  { %2986 = vsyncpa [#allocation4 + $0x1], 1 }
 0x60c   :  { %2987 = vsyncpa [#allocation7], 1 }
 0x60d   :  { %2988 = vsyncpa [#allocation5], 1 }
 0x60e   :  { %2990 = vsyncpa [#allocation5 + $0x1], 1 }

</bundles_post_ra>
